<compile_context>
chip_gen: v5e
topology: v5e:2x2
jax: 0.10.0
libtpu: 0.0.40
codegen_flags: <defaults>
</compile_context>

<pallas_src>
import functools

import jax
import jax.numpy as jnp
from jax.experimental import pallas as pl
from jax.experimental.pallas import tpu as pltpu


def _self_attention_kernel(x_ref, wqkv_ref, wu_ref, bu_ref, o_ref, *, heads):
    bb, t, e = x_ref.shape            # block of batch elements
    he = heads * e
    bt = bb * t

    # Flatten (bb, t) rows -> one big MXU matmul for the fused projection.
    x2 = x_ref[...].reshape(bt, e).astype(jnp.bfloat16)           # (bt, e) bf16

    # Fused Q/K/V projection: (bt, e) @ (e, 3*h*e).  1/sqrt(e) is pre-folded
    # into the Wq columns of the fused weight.
    qkv = jnp.dot(x2, wqkv_ref[...], preferred_element_type=jnp.float32)
    qkv = qkv.astype(jnp.bfloat16)                                # (bt, 3*he)

    # 128-lane-aligned splits (he = 256 here) -> free vreg-boundary slices.
    q = qkv[:, 0 * he:1 * he].reshape(bb, t, he)
    k = qkv[:, 1 * he:2 * he].reshape(bb, t, he)
    v = qkv[:, 2 * he:3 * he].reshape(bb, t, he)

    # Per-head attention, batched over the bb batch elements in this block.
    # Head hi owns the contiguous column slice [hi*e, (hi+1)*e) (same mapping
    # as torch's .view(b, t, h, e)).
    head_outs = []
    for hi in range(heads):
        sl = slice(hi * e, (hi + 1) * e)
        qh = q[:, :, sl]                                          # (bb, t, e)
        kh = k[:, :, sl]
        vh = v[:, :, sl]

        s = jnp.einsum('bqe,bke->bqk', qh, kh,
                       preferred_element_type=jnp.float32)        # (bb, t, t)
        s = s - jnp.max(s, axis=-1, keepdims=True)                # f32 softmax
        p = jnp.exp(s)
        p = p * pl.reciprocal(jnp.sum(p, axis=-1, keepdims=True), approx=True)

        head_outs.append(
            jnp.einsum('bqk,bke->bqe', p.astype(jnp.bfloat16), vh,
                       preferred_element_type=jnp.float32))       # (bb, t, e)

    out = jnp.concatenate(head_outs, axis=-1)                     # (bb, t, h*e)

    # unifyheads: single (bt, h*e) x (h*e, e) MXU contraction + bias.
    y = jnp.dot(out.reshape(bt, he).astype(jnp.bfloat16), wu_ref[...],
                preferred_element_type=jnp.float32)
    y = y + bu_ref[...]                                           # (bt, e)
    o_ref[...] = y.reshape(bb, t, e).astype(o_ref.dtype)


def prepare_params(w_q, w_k, w_v, w_u, b_u, *, emb):
    """One-time parameter prep (at init, not per call): transpose to row-major
    x @ W^T layout, fold the full 1/sqrt(e) attention scale into the Wq
    columns, fuse Q/K/V into a single (e, 3*h*e) weight, cast to bf16."""
    scale = float(emb) ** -0.5        # (e**-0.25 on q) * (e**-0.25 on k)
    wq_t = jnp.asarray(w_q, jnp.float32).T * scale
    wk_t = jnp.asarray(w_k, jnp.float32).T
    wv_t = jnp.asarray(w_v, jnp.float32).T
    wqkv_t = jnp.concatenate([wq_t, wk_t, wv_t], axis=1)          # (e, 3*h*e)
    return dict(
        wqkv_t=wqkv_t.astype(jnp.bfloat16),
        wu_t=jnp.asarray(w_u, jnp.float32).T.astype(jnp.bfloat16),
        bu=jnp.asarray(b_u, jnp.float32).reshape(1, -1),
    )


def _pick_block_b(b, t):
    # Aim for >=128..256 rows per projection matmul while dividing the batch.
    target = max(1, 256 // max(t, 1))
    bb = max(1, min(b, target))
    while b % bb:
        bb -= 1
    return bb


def self_attention_pallas(x, params, *, heads, block_b=None):
    """x: (b, t, e) f32.  params: output of prepare_params()."""
    b, t, e = x.shape
    he = heads * e
    if block_b is None:
        # On v7x one may prefer a smaller block_b so the grid stays >= 2 and
        # both TensorCores get work; on v5e/v6e larger blocks win.
        block_b = _pick_block_b(b, t)
    assert b % block_b == 0

    kernel = functools.partial(_self_attention_kernel, heads=heads)

    return pl.pallas_call(
        kernel,
        out_shape=jax.ShapeDtypeStruct((b, t, e), x.dtype),
        grid_spec=pltpu.PrefetchScalarGridSpec(
            num_scalar_prefetch=0,
            grid=(b // block_b,),
            in_specs=[
                pl.BlockSpec((block_b, t, e), lambda i: (i, 0, 0)),  # x block
                pl.BlockSpec((e, 3 * he), lambda i: (0, 0)),  # [Wq*s | Wk | Wv]^T
                pl.BlockSpec((he, e), lambda i: (0, 0)),      # Wu^T
                pl.BlockSpec((1, e), lambda i: (0, 0)),       # unifyheads bias
            ],
            out_specs=pl.BlockSpec((block_b, t, e), lambda i: (i, 0, 0)),
        ),
        compiler_params=pltpu.CompilerParams(
            dimension_semantics=("parallel",)),
    )(x, params["wqkv_t"], params["wu_t"], params["bu"])


def self_attention_ref(x, w_q, w_k, w_v, w_u, b_u, *, heads):
    """Pure-JAX f32 reference mirroring the PyTorch forward exactly."""
    b, t, e = x.shape
    h = heads
    keys = (x @ w_k.T).reshape(b, t, h, e)
    queries = (x @ w_q.T).reshape(b, t, h, e)
    values = (x @ w_v.T).reshape(b, t, h, e)
    keys = jnp.transpose(keys, (0, 2, 1, 3)).reshape(b * h, t, e)
    queries = jnp.transpose(queries, (0, 2, 1, 3)).reshape(b * h, t, e)
    values = jnp.transpose(values, (0, 2, 1, 3)).reshape(b * h, t, e)
    queries = queries / e ** 0.25
    keys = keys / e ** 0.25
    dot = jnp.einsum('bqe,bke->bqk', queries, keys)
    dot = jax.nn.softmax(dot, axis=2)
    out = jnp.einsum('bqk,bke->bqe', dot, values).reshape(b, h, t, e)
    out = jnp.transpose(out, (0, 2, 1, 3)).reshape(b, t, h * e)
    return out @ w_u.T + b_u


if __name__ == "__main__":
    B, T, E, HEADS = 2, 8, 32, 8

    key = jax.random.PRNGKey(0)
    kx, kq, kk, kv, ku, kb = jax.random.split(key, 6)

    x = jax.random.normal(kx, (B, T, E), dtype=jnp.float32)
    # nn.Linear weight layout: (out_features, in_features); deterministic init.
    w_q = jax.random.normal(kq, (HEADS * E, E), dtype=jnp.float32) * 0.05
    w_k = jax.random.normal(kk, (HEADS * E, E), dtype=jnp.float32) * 0.05
    w_v = jax.random.normal(kv, (HEADS * E, E), dtype=jnp.float32) * 0.05
    w_u = jax.random.normal(ku, (E, HEADS * E), dtype=jnp.float32) * 0.05
    b_u = jax.random.normal(kb, (E,), dtype=jnp.float32) * 0.05

    params = prepare_params(w_q, w_k, w_v, w_u, b_u, emb=E)   # one-time prep

    out = self_attention_pallas(x, params, heads=HEADS)
    out = jax.block_until_ready(out)

    ref = self_attention_ref(x, w_q, w_k, w_v, w_u, b_u, heads=HEADS)
    assert out.shape == (B, T, E)
    # bf16 MXU operands + approx reciprocal -> relaxed tolerance vs f32 ref.
    max_err = float(jnp.max(jnp.abs(out - ref)))
    assert jnp.allclose(out, ref, atol=3e-2, rtol=3e-2), max_err

    print("KERNEL_OK")
</pallas_src>

<mosaic_0001>
module attributes {stable_mosaic.version = 11 : i64} {
  func.func @_self_attention_kernel(%arg0: i32, %arg1: memref<2x8x32xf32, #tpu.memory_space<vmem>>, %arg2: memref<32x768xbf16, #tpu.memory_space<vmem>>, %arg3: memref<256x32xbf16, #tpu.memory_space<vmem>>, %arg4: memref<1x32xf32, #tpu.memory_space<vmem>>, %arg5: memref<2x8x32xf32, #tpu.memory_space<vmem>>) attributes {dimension_semantics = [#tpu.dimension_semantics<parallel>], iteration_bounds = array<i64: 1>, scalar_prefetch = 0 : i64, scratch_operands = 0 : i64, tpu.core_type = #tpu.core_type<tc>, window_params = [{transform_indices = @transform_0, window_bounds = array<i64: 2, 8, 32>}, {pipeline_mode = #tpu.pipeline_mode<synchronous>, transform_indices = @transform_1, window_bounds = array<i64: 32, 768>}, {pipeline_mode = #tpu.pipeline_mode<synchronous>, transform_indices = @transform_2, window_bounds = array<i64: 256, 32>}, {pipeline_mode = #tpu.pipeline_mode<synchronous>, transform_indices = @transform_3, window_bounds = array<i64: 1, 32>}, {transform_indices = @transform_4, window_bounds = array<i64: 2, 8, 32>}]} {
    %c0 = arith.constant 0 : index
    %c0_0 = arith.constant 0 : index
    %c0_1 = arith.constant 0 : index
    %0 = vector.load %arg1[%c0, %c0_0, %c0_1] : memref<2x8x32xf32, #tpu.memory_space<vmem>>, vector<2x8x32xf32>
    %1 = vector.shape_cast %0 : vector<2x8x32xf32> to vector<16x32xf32>
    %2 = arith.truncf %1 : vector<16x32xf32> to vector<16x32xbf16>
    %c0_2 = arith.constant 0 : index
    %c0_3 = arith.constant 0 : index
    %3 = vector.load %arg2[%c0_2, %c0_3] : memref<32x768xbf16, #tpu.memory_space<vmem>>, vector<32x768xbf16>
    %cst = arith.constant dense<0.000000e+00> : vector<16x768xf32>
    %4 = tpu.matmul %2, %3, %cst {dimension_numbers = #tpu.dot_dimension_numbers<[1], [0], [0], [1], [0, 0, 1, 1], [], []>} : vector<16x32xbf16>, vector<32x768xbf16>, vector<16x768xf32> -> vector<16x768xf32>
    %5 = arith.truncf %4 : vector<16x768xf32> to vector<16x768xbf16>
    %6 = vector.extract_strided_slice %5 {offsets = [0, 0], sizes = [16, 256], strides = [1, 1]} : vector<16x768xbf16> to vector<16x256xbf16>
    %7 = vector.shape_cast %6 : vector<16x256xbf16> to vector<2x8x256xbf16>
    %8 = vector.extract_strided_slice %5 {offsets = [0, 256], sizes = [16, 256], strides = [1, 1]} : vector<16x768xbf16> to vector<16x256xbf16>
    %9 = vector.shape_cast %8 : vector<16x256xbf16> to vector<2x8x256xbf16>
    %10 = vector.extract_strided_slice %5 {offsets = [0, 512], sizes = [16, 256], strides = [1, 1]} : vector<16x768xbf16> to vector<16x256xbf16>
    %11 = vector.shape_cast %10 : vector<16x256xbf16> to vector<2x8x256xbf16>
    %12 = vector.extract_strided_slice %7 {offsets = [0, 0, 0], sizes = [2, 8, 32], strides = [1, 1, 1]} : vector<2x8x256xbf16> to vector<2x8x32xbf16>
    %13 = vector.extract_strided_slice %9 {offsets = [0, 0, 0], sizes = [2, 8, 32], strides = [1, 1, 1]} : vector<2x8x256xbf16> to vector<2x8x32xbf16>
    %14 = vector.extract_strided_slice %11 {offsets = [0, 0, 0], sizes = [2, 8, 32], strides = [1, 1, 1]} : vector<2x8x256xbf16> to vector<2x8x32xbf16>
    "tpu.trace_start"() <{level = 10 : i32, message = "bqe,bke->bqk"}> : () -> ()
    %cst_4 = arith.constant dense<0.000000e+00> : vector<2x8x8xf32>
    %15 = tpu.matmul %12, %13, %cst_4 {dimension_numbers = #tpu.dot_dimension_numbers<[2], [2], [1], [1], [0, 0, 0, 1, 1, 1], [0], [0]>} : vector<2x8x32xbf16>, vector<2x8x32xbf16>, vector<2x8x8xf32> -> vector<2x8x8xf32>
    "tpu.trace_stop"() : () -> ()
    %cst_5 = arith.constant dense<0xFF800000> : vector<2x8xf32>
    %16 = vector.multi_reduction <maximumf>, %15, %cst_5 [2] : vector<2x8x8xf32> to vector<2x8xf32>
    %17 = vector.shape_cast %16 : vector<2x8xf32> to vector<2x8x1xf32>
    %18 = vector.broadcast %17 : vector<2x8x1xf32> to vector<2x8x8xf32>
    %19 = arith.subf %15, %18 : vector<2x8x8xf32>
    %20 = math.exp %19 : vector<2x8x8xf32>
    %cst_6 = arith.constant dense<0.000000e+00> : vector<2x8xf32>
    %21 = vector.multi_reduction <add>, %20, %cst_6 [2] : vector<2x8x8xf32> to vector<2x8xf32>
    %22 = vector.shape_cast %21 : vector<2x8xf32> to vector<2x8x1xf32>
    %23 = tpu.reciprocal %22 {approx = true} : vector<2x8x1xf32> -> vector<2x8x1xf32>
    %24 = vector.broadcast %23 : vector<2x8x1xf32> to vector<2x8x8xf32>
    %25 = arith.mulf %20, %24 : vector<2x8x8xf32>
    %26 = arith.truncf %25 : vector<2x8x8xf32> to vector<2x8x8xbf16>
    "tpu.trace_start"() <{level = 10 : i32, message = "bqk,bke->bqe"}> : () -> ()
    %cst_7 = arith.constant dense<0.000000e+00> : vector<2x8x32xf32>
    %27 = tpu.matmul %26, %14, %cst_7 {dimension_numbers = #tpu.dot_dimension_numbers<[2], [1], [1], [2], [0, 0, 0, 1, 1, 2], [0], [0]>} : vector<2x8x8xbf16>, vector<2x8x32xbf16>, vector<2x8x32xf32> -> vector<2x8x32xf32>
    "tpu.trace_stop"() : () -> ()
    %28 = vector.extract_strided_slice %7 {offsets = [0, 0, 32], sizes = [2, 8, 32], strides = [1, 1, 1]} : vector<2x8x256xbf16> to vector<2x8x32xbf16>
    %29 = vector.extract_strided_slice %9 {offsets = [0, 0, 32], sizes = [2, 8, 32], strides = [1, 1, 1]} : vector<2x8x256xbf16> to vector<2x8x32xbf16>
    %30 = vector.extract_strided_slice %11 {offsets = [0, 0, 32], sizes = [2, 8, 32], strides = [1, 1, 1]} : vector<2x8x256xbf16> to vector<2x8x32xbf16>
    "tpu.trace_start"() <{level = 10 : i32, message = "bqe,bke->bqk"}> : () -> ()
    %cst_8 = arith.constant dense<0.000000e+00> : vector<2x8x8xf32>
    %31 = tpu.matmul %28, %29, %cst_8 {dimension_numbers = #tpu.dot_dimension_numbers<[2], [2], [1], [1], [0, 0, 0, 1, 1, 1], [0], [0]>} : vector<2x8x32xbf16>, vector<2x8x32xbf16>, vector<2x8x8xf32> -> vector<2x8x8xf32>
    "tpu.trace_stop"() : () -> ()
    %cst_9 = arith.constant dense<0xFF800000> : vector<2x8xf32>
    %32 = vector.multi_reduction <maximumf>, %31, %cst_9 [2] : vector<2x8x8xf32> to vector<2x8xf32>
    %33 = vector.shape_cast %32 : vector<2x8xf32> to vector<2x8x1xf32>
    %34 = vector.broadcast %33 : vector<2x8x1xf32> to vector<2x8x8xf32>
    %35 = arith.subf %31, %34 : vector<2x8x8xf32>
    %36 = math.exp %35 : vector<2x8x8xf32>
    %cst_10 = arith.constant dense<0.000000e+00> : vector<2x8xf32>
    %37 = vector.multi_reduction <add>, %36, %cst_10 [2] : vector<2x8x8xf32> to vector<2x8xf32>
    %38 = vector.shape_cast %37 : vector<2x8xf32> to vector<2x8x1xf32>
    %39 = tpu.reciprocal %38 {approx = true} : vector<2x8x1xf32> -> vector<2x8x1xf32>
    %40 = vector.broadcast %39 : vector<2x8x1xf32> to vector<2x8x8xf32>
    %41 = arith.mulf %36, %40 : vector<2x8x8xf32>
    %42 = arith.truncf %41 : vector<2x8x8xf32> to vector<2x8x8xbf16>
    "tpu.trace_start"() <{level = 10 : i32, message = "bqk,bke->bqe"}> : () -> ()
    %cst_11 = arith.constant dense<0.000000e+00> : vector<2x8x32xf32>
    %43 = tpu.matmul %42, %30, %cst_11 {dimension_numbers = #tpu.dot_dimension_numbers<[2], [1], [1], [2], [0, 0, 0, 1, 1, 2], [0], [0]>} : vector<2x8x8xbf16>, vector<2x8x32xbf16>, vector<2x8x32xf32> -> vector<2x8x32xf32>
    "tpu.trace_stop"() : () -> ()
    %44 = vector.extract_strided_slice %7 {offsets = [0, 0, 64], sizes = [2, 8, 32], strides = [1, 1, 1]} : vector<2x8x256xbf16> to vector<2x8x32xbf16>
    %45 = vector.extract_strided_slice %9 {offsets = [0, 0, 64], sizes = [2, 8, 32], strides = [1, 1, 1]} : vector<2x8x256xbf16> to vector<2x8x32xbf16>
    %46 = vector.extract_strided_slice %11 {offsets = [0, 0, 64], sizes = [2, 8, 32], strides = [1, 1, 1]} : vector<2x8x256xbf16> to vector<2x8x32xbf16>
    "tpu.trace_start"() <{level = 10 : i32, message = "bqe,bke->bqk"}> : () -> ()
    %cst_12 = arith.constant dense<0.000000e+00> : vector<2x8x8xf32>
    %47 = tpu.matmul %44, %45, %cst_12 {dimension_numbers = #tpu.dot_dimension_numbers<[2], [2], [1], [1], [0, 0, 0, 1, 1, 1], [0], [0]>} : vector<2x8x32xbf16>, vector<2x8x32xbf16>, vector<2x8x8xf32> -> vector<2x8x8xf32>
    "tpu.trace_stop"() : () -> ()
    %cst_13 = arith.constant dense<0xFF800000> : vector<2x8xf32>
    %48 = vector.multi_reduction <maximumf>, %47, %cst_13 [2] : vector<2x8x8xf32> to vector<2x8xf32>
    %49 = vector.shape_cast %48 : vector<2x8xf32> to vector<2x8x1xf32>
    %50 = vector.broadcast %49 : vector<2x8x1xf32> to vector<2x8x8xf32>
    %51 = arith.subf %47, %50 : vector<2x8x8xf32>
    %52 = math.exp %51 : vector<2x8x8xf32>
    %cst_14 = arith.constant dense<0.000000e+00> : vector<2x8xf32>
    %53 = vector.multi_reduction <add>, %52, %cst_14 [2] : vector<2x8x8xf32> to vector<2x8xf32>
    %54 = vector.shape_cast %53 : vector<2x8xf32> to vector<2x8x1xf32>
    %55 = tpu.reciprocal %54 {approx = true} : vector<2x8x1xf32> -> vector<2x8x1xf32>
    %56 = vector.broadcast %55 : vector<2x8x1xf32> to vector<2x8x8xf32>
    %57 = arith.mulf %52, %56 : vector<2x8x8xf32>
    %58 = arith.truncf %57 : vector<2x8x8xf32> to vector<2x8x8xbf16>
    "tpu.trace_start"() <{level = 10 : i32, message = "bqk,bke->bqe"}> : () -> ()
    %cst_15 = arith.constant dense<0.000000e+00> : vector<2x8x32xf32>
    %59 = tpu.matmul %58, %46, %cst_15 {dimension_numbers = #tpu.dot_dimension_numbers<[2], [1], [1], [2], [0, 0, 0, 1, 1, 2], [0], [0]>} : vector<2x8x8xbf16>, vector<2x8x32xbf16>, vector<2x8x32xf32> -> vector<2x8x32xf32>
    "tpu.trace_stop"() : () -> ()
    %60 = vector.extract_strided_slice %7 {offsets = [0, 0, 96], sizes = [2, 8, 32], strides = [1, 1, 1]} : vector<2x8x256xbf16> to vector<2x8x32xbf16>
    %61 = vector.extract_strided_slice %9 {offsets = [0, 0, 96], sizes = [2, 8, 32], strides = [1, 1, 1]} : vector<2x8x256xbf16> to vector<2x8x32xbf16>
    %62 = vector.extract_strided_slice %11 {offsets = [0, 0, 96], sizes = [2, 8, 32], strides = [1, 1, 1]} : vector<2x8x256xbf16> to vector<2x8x32xbf16>
    "tpu.trace_start"() <{level = 10 : i32, message = "bqe,bke->bqk"}> : () -> ()
    %cst_16 = arith.constant dense<0.000000e+00> : vector<2x8x8xf32>
    %63 = tpu.matmul %60, %61, %cst_16 {dimension_numbers = #tpu.dot_dimension_numbers<[2], [2], [1], [1], [0, 0, 0, 1, 1, 1], [0], [0]>} : vector<2x8x32xbf16>, vector<2x8x32xbf16>, vector<2x8x8xf32> -> vector<2x8x8xf32>
    "tpu.trace_stop"() : () -> ()
    %cst_17 = arith.constant dense<0xFF800000> : vector<2x8xf32>
    %64 = vector.multi_reduction <maximumf>, %63, %cst_17 [2] : vector<2x8x8xf32> to vector<2x8xf32>
    %65 = vector.shape_cast %64 : vector<2x8xf32> to vector<2x8x1xf32>
    %66 = vector.broadcast %65 : vector<2x8x1xf32> to vector<2x8x8xf32>
    %67 = arith.subf %63, %66 : vector<2x8x8xf32>
    %68 = math.exp %67 : vector<2x8x8xf32>
    %cst_18 = arith.constant dense<0.000000e+00> : vector<2x8xf32>
    %69 = vector.multi_reduction <add>, %68, %cst_18 [2] : vector<2x8x8xf32> to vector<2x8xf32>
    %70 = vector.shape_cast %69 : vector<2x8xf32> to vector<2x8x1xf32>
    %71 = tpu.reciprocal %70 {approx = true} : vector<2x8x1xf32> -> vector<2x8x1xf32>
    %72 = vector.broadcast %71 : vector<2x8x1xf32> to vector<2x8x8xf32>
    %73 = arith.mulf %68, %72 : vector<2x8x8xf32>
    %74 = arith.truncf %73 : vector<2x8x8xf32> to vector<2x8x8xbf16>
    "tpu.trace_start"() <{level = 10 : i32, message = "bqk,bke->bqe"}> : () -> ()
    %cst_19 = arith.constant dense<0.000000e+00> : vector<2x8x32xf32>
    %75 = tpu.matmul %74, %62, %cst_19 {dimension_numbers = #tpu.dot_dimension_numbers<[2], [1], [1], [2], [0, 0, 0, 1, 1, 2], [0], [0]>} : vector<2x8x8xbf16>, vector<2x8x32xbf16>, vector<2x8x32xf32> -> vector<2x8x32xf32>
    "tpu.trace_stop"() : () -> ()
    %76 = vector.extract_strided_slice %7 {offsets = [0, 0, 128], sizes = [2, 8, 32], strides = [1, 1, 1]} : vector<2x8x256xbf16> to vector<2x8x32xbf16>
    %77 = vector.extract_strided_slice %9 {offsets = [0, 0, 128], sizes = [2, 8, 32], strides = [1, 1, 1]} : vector<2x8x256xbf16> to vector<2x8x32xbf16>
    %78 = vector.extract_strided_slice %11 {offsets = [0, 0, 128], sizes = [2, 8, 32], strides = [1, 1, 1]} : vector<2x8x256xbf16> to vector<2x8x32xbf16>
    "tpu.trace_start"() <{level = 10 : i32, message = "bqe,bke->bqk"}> : () -> ()
    %cst_20 = arith.constant dense<0.000000e+00> : vector<2x8x8xf32>
    %79 = tpu.matmul %76, %77, %cst_20 {dimension_numbers = #tpu.dot_dimension_numbers<[2], [2], [1], [1], [0, 0, 0, 1, 1, 1], [0], [0]>} : vector<2x8x32xbf16>, vector<2x8x32xbf16>, vector<2x8x8xf32> -> vector<2x8x8xf32>
    "tpu.trace_stop"() : () -> ()
    %cst_21 = arith.constant dense<0xFF800000> : vector<2x8xf32>
    %80 = vector.multi_reduction <maximumf>, %79, %cst_21 [2] : vector<2x8x8xf32> to vector<2x8xf32>
    %81 = vector.shape_cast %80 : vector<2x8xf32> to vector<2x8x1xf32>
    %82 = vector.broadcast %81 : vector<2x8x1xf32> to vector<2x8x8xf32>
    %83 = arith.subf %79, %82 : vector<2x8x8xf32>
    %84 = math.exp %83 : vector<2x8x8xf32>
    %cst_22 = arith.constant dense<0.000000e+00> : vector<2x8xf32>
    %85 = vector.multi_reduction <add>, %84, %cst_22 [2] : vector<2x8x8xf32> to vector<2x8xf32>
    %86 = vector.shape_cast %85 : vector<2x8xf32> to vector<2x8x1xf32>
    %87 = tpu.reciprocal %86 {approx = true} : vector<2x8x1xf32> -> vector<2x8x1xf32>
    %88 = vector.broadcast %87 : vector<2x8x1xf32> to vector<2x8x8xf32>
    %89 = arith.mulf %84, %88 : vector<2x8x8xf32>
    %90 = arith.truncf %89 : vector<2x8x8xf32> to vector<2x8x8xbf16>
    "tpu.trace_start"() <{level = 10 : i32, message = "bqk,bke->bqe"}> : () -> ()
    %cst_23 = arith.constant dense<0.000000e+00> : vector<2x8x32xf32>
    %91 = tpu.matmul %90, %78, %cst_23 {dimension_numbers = #tpu.dot_dimension_numbers<[2], [1], [1], [2], [0, 0, 0, 1, 1, 2], [0], [0]>} : vector<2x8x8xbf16>, vector<2x8x32xbf16>, vector<2x8x32xf32> -> vector<2x8x32xf32>
    "tpu.trace_stop"() : () -> ()
    %92 = vector.extract_strided_slice %7 {offsets = [0, 0, 160], sizes = [2, 8, 32], strides = [1, 1, 1]} : vector<2x8x256xbf16> to vector<2x8x32xbf16>
    %93 = vector.extract_strided_slice %9 {offsets = [0, 0, 160], sizes = [2, 8, 32], strides = [1, 1, 1]} : vector<2x8x256xbf16> to vector<2x8x32xbf16>
    %94 = vector.extract_strided_slice %11 {offsets = [0, 0, 160], sizes = [2, 8, 32], strides = [1, 1, 1]} : vector<2x8x256xbf16> to vector<2x8x32xbf16>
    "tpu.trace_start"() <{level = 10 : i32, message = "bqe,bke->bqk"}> : () -> ()
    %cst_24 = arith.constant dense<0.000000e+00> : vector<2x8x8xf32>
    %95 = tpu.matmul %92, %93, %cst_24 {dimension_numbers = #tpu.dot_dimension_numbers<[2], [2], [1], [1], [0, 0, 0, 1, 1, 1], [0], [0]>} : vector<2x8x32xbf16>, vector<2x8x32xbf16>, vector<2x8x8xf32> -> vector<2x8x8xf32>
    "tpu.trace_stop"() : () -> ()
    %cst_25 = arith.constant dense<0xFF800000> : vector<2x8xf32>
    %96 = vector.multi_reduction <maximumf>, %95, %cst_25 [2] : vector<2x8x8xf32> to vector<2x8xf32>
    %97 = vector.shape_cast %96 : vector<2x8xf32> to vector<2x8x1xf32>
    %98 = vector.broadcast %97 : vector<2x8x1xf32> to vector<2x8x8xf32>
    %99 = arith.subf %95, %98 : vector<2x8x8xf32>
    %100 = math.exp %99 : vector<2x8x8xf32>
    %cst_26 = arith.constant dense<0.000000e+00> : vector<2x8xf32>
    %101 = vector.multi_reduction <add>, %100, %cst_26 [2] : vector<2x8x8xf32> to vector<2x8xf32>
    %102 = vector.shape_cast %101 : vector<2x8xf32> to vector<2x8x1xf32>
    %103 = tpu.reciprocal %102 {approx = true} : vector<2x8x1xf32> -> vector<2x8x1xf32>
    %104 = vector.broadcast %103 : vector<2x8x1xf32> to vector<2x8x8xf32>
    %105 = arith.mulf %100, %104 : vector<2x8x8xf32>
    %106 = arith.truncf %105 : vector<2x8x8xf32> to vector<2x8x8xbf16>
    "tpu.trace_start"() <{level = 10 : i32, message = "bqk,bke->bqe"}> : () -> ()
    %cst_27 = arith.constant dense<0.000000e+00> : vector<2x8x32xf32>
    %107 = tpu.matmul %106, %94, %cst_27 {dimension_numbers = #tpu.dot_dimension_numbers<[2], [1], [1], [2], [0, 0, 0, 1, 1, 2], [0], [0]>} : vector<2x8x8xbf16>, vector<2x8x32xbf16>, vector<2x8x32xf32> -> vector<2x8x32xf32>
    "tpu.trace_stop"() : () -> ()
    %108 = vector.extract_strided_slice %7 {offsets = [0, 0, 192], sizes = [2, 8, 32], strides = [1, 1, 1]} : vector<2x8x256xbf16> to vector<2x8x32xbf16>
    %109 = vector.extract_strided_slice %9 {offsets = [0, 0, 192], sizes = [2, 8, 32], strides = [1, 1, 1]} : vector<2x8x256xbf16> to vector<2x8x32xbf16>
    %110 = vector.extract_strided_slice %11 {offsets = [0, 0, 192], sizes = [2, 8, 32], strides = [1, 1, 1]} : vector<2x8x256xbf16> to vector<2x8x32xbf16>
    "tpu.trace_start"() <{level = 10 : i32, message = "bqe,bke->bqk"}> : () -> ()
    %cst_28 = arith.constant dense<0.000000e+00> : vector<2x8x8xf32>
    %111 = tpu.matmul %108, %109, %cst_28 {dimension_numbers = #tpu.dot_dimension_numbers<[2], [2], [1], [1], [0, 0, 0, 1, 1, 1], [0], [0]>} : vector<2x8x32xbf16>, vector<2x8x32xbf16>, vector<2x8x8xf32> -> vector<2x8x8xf32>
    "tpu.trace_stop"() : () -> ()
    %cst_29 = arith.constant dense<0xFF800000> : vector<2x8xf32>
    %112 = vector.multi_reduction <maximumf>, %111, %cst_29 [2] : vector<2x8x8xf32> to vector<2x8xf32>
    %113 = vector.shape_cast %112 : vector<2x8xf32> to vector<2x8x1xf32>
    %114 = vector.broadcast %113 : vector<2x8x1xf32> to vector<2x8x8xf32>
    %115 = arith.subf %111, %114 : vector<2x8x8xf32>
    %116 = math.exp %115 : vector<2x8x8xf32>
    %cst_30 = arith.constant dense<0.000000e+00> : vector<2x8xf32>
    %117 = vector.multi_reduction <add>, %116, %cst_30 [2] : vector<2x8x8xf32> to vector<2x8xf32>
    %118 = vector.shape_cast %117 : vector<2x8xf32> to vector<2x8x1xf32>
    %119 = tpu.reciprocal %118 {approx = true} : vector<2x8x1xf32> -> vector<2x8x1xf32>
    %120 = vector.broadcast %119 : vector<2x8x1xf32> to vector<2x8x8xf32>
    %121 = arith.mulf %116, %120 : vector<2x8x8xf32>
    %122 = arith.truncf %121 : vector<2x8x8xf32> to vector<2x8x8xbf16>
    "tpu.trace_start"() <{level = 10 : i32, message = "bqk,bke->bqe"}> : () -> ()
    %cst_31 = arith.constant dense<0.000000e+00> : vector<2x8x32xf32>
    %123 = tpu.matmul %122, %110, %cst_31 {dimension_numbers = #tpu.dot_dimension_numbers<[2], [1], [1], [2], [0, 0, 0, 1, 1, 2], [0], [0]>} : vector<2x8x8xbf16>, vector<2x8x32xbf16>, vector<2x8x32xf32> -> vector<2x8x32xf32>
    "tpu.trace_stop"() : () -> ()
    %124 = vector.extract_strided_slice %7 {offsets = [0, 0, 224], sizes = [2, 8, 32], strides = [1, 1, 1]} : vector<2x8x256xbf16> to vector<2x8x32xbf16>
    %125 = vector.extract_strided_slice %9 {offsets = [0, 0, 224], sizes = [2, 8, 32], strides = [1, 1, 1]} : vector<2x8x256xbf16> to vector<2x8x32xbf16>
    %126 = vector.extract_strided_slice %11 {offsets = [0, 0, 224], sizes = [2, 8, 32], strides = [1, 1, 1]} : vector<2x8x256xbf16> to vector<2x8x32xbf16>
    "tpu.trace_start"() <{level = 10 : i32, message = "bqe,bke->bqk"}> : () -> ()
    %cst_32 = arith.constant dense<0.000000e+00> : vector<2x8x8xf32>
    %127 = tpu.matmul %124, %125, %cst_32 {dimension_numbers = #tpu.dot_dimension_numbers<[2], [2], [1], [1], [0, 0, 0, 1, 1, 1], [0], [0]>} : vector<2x8x32xbf16>, vector<2x8x32xbf16>, vector<2x8x8xf32> -> vector<2x8x8xf32>
    "tpu.trace_stop"() : () -> ()
    %cst_33 = arith.constant dense<0xFF800000> : vector<2x8xf32>
    %128 = vector.multi_reduction <maximumf>, %127, %cst_33 [2] : vector<2x8x8xf32> to vector<2x8xf32>
    %129 = vector.shape_cast %128 : vector<2x8xf32> to vector<2x8x1xf32>
    %130 = vector.broadcast %129 : vector<2x8x1xf32> to vector<2x8x8xf32>
    %131 = arith.subf %127, %130 : vector<2x8x8xf32>
    %132 = math.exp %131 : vector<2x8x8xf32>
    %cst_34 = arith.constant dense<0.000000e+00> : vector<2x8xf32>
    %133 = vector.multi_reduction <add>, %132, %cst_34 [2] : vector<2x8x8xf32> to vector<2x8xf32>
    %134 = vector.shape_cast %133 : vector<2x8xf32> to vector<2x8x1xf32>
    %135 = tpu.reciprocal %134 {approx = true} : vector<2x8x1xf32> -> vector<2x8x1xf32>
    %136 = vector.broadcast %135 : vector<2x8x1xf32> to vector<2x8x8xf32>
    %137 = arith.mulf %132, %136 : vector<2x8x8xf32>
    %138 = arith.truncf %137 : vector<2x8x8xf32> to vector<2x8x8xbf16>
    "tpu.trace_start"() <{level = 10 : i32, message = "bqk,bke->bqe"}> : () -> ()
    %cst_35 = arith.constant dense<0.000000e+00> : vector<2x8x32xf32>
    %139 = tpu.matmul %138, %126, %cst_35 {dimension_numbers = #tpu.dot_dimension_numbers<[2], [1], [1], [2], [0, 0, 0, 1, 1, 2], [0], [0]>} : vector<2x8x8xbf16>, vector<2x8x32xbf16>, vector<2x8x32xf32> -> vector<2x8x32xf32>
    "tpu.trace_stop"() : () -> ()
    %140 = tpu.concatenate %27, %43, %59, %75, %91, %107, %123, %139 in 2 : vector<2x8x32xf32>, vector<2x8x32xf32>, vector<2x8x32xf32>, vector<2x8x32xf32>, vector<2x8x32xf32>, vector<2x8x32xf32>, vector<2x8x32xf32>, vector<2x8x32xf32> -> vector<2x8x256xf32>
    %141 = vector.shape_cast %140 : vector<2x8x256xf32> to vector<16x256xf32>
    %142 = arith.truncf %141 : vector<16x256xf32> to vector<16x256xbf16>
    %c0_36 = arith.constant 0 : index
    %c0_37 = arith.constant 0 : index
    %143 = vector.load %arg3[%c0_36, %c0_37] : memref<256x32xbf16, #tpu.memory_space<vmem>>, vector<256x32xbf16>
    %cst_38 = arith.constant dense<0.000000e+00> : vector<16x32xf32>
    %144 = tpu.matmul %142, %143, %cst_38 {dimension_numbers = #tpu.dot_dimension_numbers<[1], [0], [0], [1], [0, 0, 1, 1], [], []>} : vector<16x256xbf16>, vector<256x32xbf16>, vector<16x32xf32> -> vector<16x32xf32>
    %c0_39 = arith.constant 0 : index
    %c0_40 = arith.constant 0 : index
    %145 = vector.load %arg4[%c0_39, %c0_40] : memref<1x32xf32, #tpu.memory_space<vmem>>, vector<1x32xf32>
    %146 = vector.broadcast %145 : vector<1x32xf32> to vector<16x32xf32>
    %147 = arith.addf %144, %146 : vector<16x32xf32>
    %148 = vector.shape_cast %147 : vector<16x32xf32> to vector<2x8x32xf32>
    %c0_41 = arith.constant 0 : index
    %c0_42 = arith.constant 0 : index
    %c0_43 = arith.constant 0 : index
    %149 = vector.load %arg5[%c0_41, %c0_42, %c0_43] : memref<2x8x32xf32, #tpu.memory_space<vmem>>, vector<2x8x32xf32>
    tpu.vector_store %arg5[%c0_41, %c0_42, %c0_43], %148 {strides = array<i32>} : memref<2x8x32xf32, #tpu.memory_space<vmem>>, vector<2x8x32xf32>,
    return
  }
  func.func @transform_0(%arg0: i32) -> (i32, i32, i32) {
    %c0_i32 = arith.constant 0 : i32
    %c0_i32_0 = arith.constant 0 : i32
    %c0_i32_1 = arith.constant 0 : i32
    return %arg0, %c0_i32, %c0_i32_0 : i32, i32, i32
  }
  func.func @transform_1(%arg0: i32) -> (i32, i32) {
    %c0_i32 = arith.constant 0 : i32
    %c0_i32_0 = arith.constant 0 : i32
    %c0_i32_1 = arith.constant 0 : i32
    return %c0_i32, %c0_i32_0 : i32, i32
  }
  func.func @transform_2(%arg0: i32) -> (i32, i32) {
    %c0_i32 = arith.constant 0 : i32
    %c0_i32_0 = arith.constant 0 : i32
    %c0_i32_1 = arith.constant 0 : i32
    return %c0_i32, %c0_i32_0 : i32, i32
  }
  func.func @transform_3(%arg0: i32) -> (i32, i32) {
    %c0_i32 = arith.constant 0 : i32
    %c0_i32_0 = arith.constant 0 : i32
    %c0_i32_1 = arith.constant 0 : i32
    return %c0_i32, %c0_i32_0 : i32, i32
  }
  func.func @transform_4(%arg0: i32) -> (i32, i32, i32) {
    %c0_i32 = arith.constant 0 : i32
    %c0_i32_0 = arith.constant 0 : i32
    %c0_i32_1 = arith.constant 0 : i32
    return %arg0, %c0_i32, %c0_i32_0 : i32, i32, i32
  }
}

</mosaic_0001>

<bundles_post_ra>
// kernel: tpu_custom_call.1
= control target key start
LH: loop header
LB: loop body
LE: loop exit
PB: predicated region body
PF: predicated region fallthrough
CT: control target
= control target key end

     0   :  { %vm94_vm0 = vcmask 261120   ;;  %s2179_s0 = inlined_call_operand.vmem [shape: f32[2,8,32], index: 0, kind: input, shape index: {}]   ;;  %s2180_s1 = inlined_call_operand.vmem [shape: bf16[32,768], index: 1, kind: input, shape index: {}]   ;;  %s2181_s2 = inlined_call_operand.vmem [shape: bf16[256,32], index: 2, kind: input, shape index: {}]   ;;  %s2182_s3 = inlined_call_operand.vmem [shape: f32[1,32], index: 3, kind: input, shape index: {}]   ;;  %s2183_s4 = inlined_call_operand.hbm [shape: f32[2,8,32], index: 4, kind: output, shape index: {}]  }
   0x1   :  { %v1374_v0 = vld [vmem:[%s2180_s1 + $0x30] sm:$0xf]  ;;  %v1507_v1 = vld [vmem:[%s2180_s1 + $0x44] sm:$0xf0]  ;;  %v1504_v2 = vld [vmem:[%s2180_s1 + $0x34] sm:$0xf] }
   0x2   :  { %v1375_v3 = vor.u32 %v1507_v1, %v1374_v0  ;;  %v1376_v4 = vld [vmem:[%s2180_s1 + $0x48] sm:$0xf0]  ;;  %v1382_v5 = vld [vmem:[%s2180_s1 + $0x38] sm:$0xf]  ;;  %v1508_v6 = vld [vmem:[%s2180_s1 + $0x4c] sm:$0xf0] }
   0x3   :  { %v1379_v7 = vor.u32 %v1504_v2, %v1376_v4  ;;  %v1383_v8 = vor.u32 %v1508_v6, %v1382_v5  ;;  %v1505_v9 = vld [vmem:[%s2180_s1 + $0x3c] sm:$0xf]  ;;  %v1384_v10 = vld [vmem:[%s2180_s1 + $0x50] sm:$0xf0]  ;;  %v1350_v11 = vld [vmem:[%s2180_s1] sm:$0xf] }
   0x4   :  { %104 = vmatpush.bf16.msra.mxu0 %v1375_v3  ;;  %v1387_v12 = vor.u32 %v1505_v9, %v1384_v10  ;;  %v1501_v13 = vld [vmem:[%s2180_s1 + $0x14] sm:$0xf0]  ;;  %v1498_v14 = vld [vmem:[%s2180_s1 + $0x4] sm:$0xf]  ;;  %v1352_v15 = vld [vmem:[%s2180_s1 + $0x18] sm:$0xf0] }
   0x5   :  { %118 = vmatpush.bf16.msra.mxu1 %v1379_v7  ;;  %132 = vmatpush.bf16.msra.mxu2 %v1383_v8  ;;  %v1351_v16 = vor.u32 %v1501_v13, %v1350_v11  ;;  %v1355_v17 = vor.u32 %v1498_v14, %v1352_v15  ;;  %v1358_v18 = vld [vmem:[%s2180_s1 + $0x8] sm:$0xf]  ;;  %v1502_v19 = vld [vmem:[%s2180_s1 + $0x1c] sm:$0xf0]  ;;  %v1499_v20 = vld [vmem:[%s2180_s1 + $0xc] sm:$0xf] }
   0x6   :  { %146 = vmatpush.bf16.msra.mxu3 %v1387_v12  ;;  %v1359_v21 = vor.u32 %v1502_v19, %v1358_v18  ;;  %v1360_v22 = vld [vmem:[%s2180_s1 + $0x20] sm:$0xf0]  ;;  %v20_v24 = vld [vmem:[%s2179_s0 + $0x8] sm:$0xff]  ;;  %v1390_v27 = vld [vmem:[%s2180_s1 + $0x40] sm:$0xf] }
   0x7   :  { %v19_v23 = vld [vmem:[%s2179_s0] sm:$0xff]  ;;  %v1363_v25 = vor.u32 %v1499_v20, %v1360_v22  ;;  %v1509_v28 = vld [vmem:[%s2180_s1 + $0x54] sm:$0xf0]  ;;  %v1392_v31 = vld [vmem:[%s2180_s1 + $0x58] sm:$0xf0] }
   0x8   :  { %v21_v26 = vpack.c.bf16 %v20_v24, %v19_v23  ;;  %v1506_v29 = vld [vmem:[%s2180_s1 + $0x44] sm:$0xf]  ;;  %105 = vmatpush.bf16.msra.mxu0 %v1351_v16  ;;  %v1391_v30 = vor.u32 %v1509_v28, %v1390_v27  ;;  %v1366_v32 = vld [vmem:[%s2180_s1 + $0x10] sm:$0xf]  ;;  %v1503_v33 = vld [vmem:[%s2180_s1 + $0x24] sm:$0xf0] }
   0x9   :  { %119 = vmatpush.bf16.msra.mxu1 %v1355_v17  ;;  %133 = vmatpush.bf16.msra.mxu2 %v1359_v21  ;;  %v1395_v34 = vor.u32 %v1506_v29, %v1392_v31  ;;  %v1500_v35 = vld [vmem:[%s2180_s1 + $0x14] sm:$0xf]  ;;  %v1368_v36 = vld [vmem:[%s2180_s1 + $0x28] sm:$0xf0]  ;;  %v1367_v37 = vor.u32 %v1503_v33, %v1366_v32 }
   0xa   :  { %147 = vmatpush.bf16.msra.mxu3 %v1363_v25 }
   0xc   :  { %160 = vmatpush.bf16.msrb.mxu0 %v1391_v30 }
   0xd   :  { %9 = vsyncpa [#allocation3], 0  ;;  %1396 = vmatmul.msk.bf16.vlgmr.msra.gmra.mxu0 %vm94_vm0, %v21_v26  ;;  %174 = vmatpush.bf16.msrb.mxu1 %v1395_v34  ;;  %v1371_v38 = vor.u32 %v1500_v35, %v1368_v36  ;;  %s1653_s1 = smov 96   ;;  %s1654_s14 = smov 64   ;;  %vm254_vm1 = vcmask 1043456   ;;  %vm226_vm2 = vcmask 64512  }
   0xe   :  { %1397 = vmatmul.msk.bf16.vlgmr.msra.gmra.mxu1 %vm94_vm0, %v21_v26  ;;  %1398 = vmatmul.msk.bf16.vlgmr.msra.gmra.mxu2 %vm94_vm0, %v21_v26  ;;  %s1655_s15 = smov 32   ;;  %vm1154_vm3 = vcmask 523264   ;;  %vm1157_vm4 = vcmask 785408   ;;  %s1656_s21 = smov [#allocation2]  }
   0xf   :  { %1399 = vmatmul.msk.bf16.vlgmr.msra.gmra.mxu3 %vm94_vm0, %v21_v26  ;;  %s1334_s22 = sshll.u32 %s1656_s21, 4  ;;  %s1336_s25 = sshll.u32 %s2183_s4, 4  ;;  %s1335_s22 = int_to_ptr.vmem [resolvable:$true] %s1334_s22  ;;  %s1337_s25 = int_to_ptr.hbm [resolvable:$true] %s1336_s25 }
  0x10   :  { %161 = vmatpush.bf16.msrb.mxu0 %v1367_v37  ;;  %s1658_s26 = smov 8  }
  0x11   :  { %175 = vmatpush.bf16.msrb.mxu1 %v1371_v38 }
  0x1d   :  { %1400 = vmatmul.msk.bf16.vlgmr.msrb.gmra.mxu0 %vm94_vm0, %v21_v26 }
  0x1e   :  { %1401 = vmatmul.msk.bf16.vlgmr.msrb.gmra.mxu1 %vm94_vm0, %v21_v26 }
  0x8a   :  { %v107_v39 = vpop.f32.mrf.mxu0 }
  0x8b   :  { %v121_v40 = vpop.f32.mrf.mxu1 }
  0x8c   :  { %v1768_v41 = vpack.c.bf16 %v121_v40, %v107_v39 }
  0x8e   :  { %v291_v42 = vunpack.c.l.b16 %v1768_v41 }
  0x90   :  { %v292_v43 = vpack.c.b16 %v291_v42, %v291_v42 }
  0x91   :  { %v135_v44 = vpop.f32.mrf.mxu2 }
  0x92   :  { %v149_v45 = vpop.f32.mrf.mxu3  ;;  %293 = vrot.lane.b32.xlu1 %v292_v43, %s1653_s1  ;;  %v109_v46 = vpop.f32.mrf.mxu0 }
  0x93   :  { %v1772_v47 = vpack.c.bf16 %v149_v45, %v135_v44  ;;  %v123_v48 = vpop.f32.mrf.mxu1 }
  0x94   :  { %v1774_v49 = vpack.c.bf16 %v123_v48, %v109_v46 }
  0x95   :  { %v192_v50 = vsel %vm94_vm0, %v1772_v47, 0  ;;  %v296_v51 = vunpack.c.l.b16 %v1772_v47  ;;  %v645_v28 = vrot.slane %v1772_v47, 4 }
  0x96   :  { %201 = vmatpush.bf16.xpose.msrb.mxu2 %v192_v50  ;;  %v320_v52 = vunpack.c.l.b16 %v1774_v49 }
  0x97   :  { %v297_v53 = vpack.c.b16 %v296_v51, %v296_v51  ;;  %v650_v33 = vsel %vm94_vm0, %v645_v28, 0 }
  0x98   :  { %v321_v54 = vpack.c.b16 %v320_v52, %v320_v52 }
  0x99   :  { %422 = vrot.lane.b32.xlu2 %v297_v53, %s1654_s14  ;;  %298 = vrot.lane.b32.xlu0 %v297_v53, %s1653_s1  ;;  %v137_v55 = vpop.f32.mrf.mxu2 }
  0x9a   :  { %v151_v56 = vpop.f32.mrf.mxu3  ;;  %322 = vrot.lane.b32.xlu1 %v321_v54, %s1653_s1  ;;  %v163_v61 = vpop.f32.mrf.mxu0 }
  0x9b   :  { %v1783_v57 = vpack.c.bf16 %v151_v56, %v137_v55  ;;  %v177_v62 = vpop.f32.mrf.mxu1  ;;  %v644_v56 = vrot.slane %v1768_v41, 4 }
  0x9c   :  { %v1814_v63 = vpack.c.bf16 %v177_v62, %v163_v61  ;;  %v665_v61 = vrot.slane %v1774_v49, 4 }
  0x9d   :  { %1402 = vmatmul.msk.bf16.vlgmr.msrb.gmra.mxu2 %vm94_vm0, %v1768_v41  ;;  %v211_v58 = vsel %vm94_vm0, %v1783_v57, 0  ;;  %v325_v59 = vunpack.c.l.b16 %v1783_v57  ;;  %v666_v37 = vrot.slane %v1783_v57, 4 }
  0x9e   :  { %220 = vmatpush.bf16.xpose.msrb.mxu3 %v211_v58  ;;  %v373_v0 = vunpack.c.l.b16 %v1814_v63  ;;  %v256_v6 = vsel %vm254_vm1, %v1814_v63, 0 }
  0x9f   :  { %v326_v60 = vpack.c.b16 %v325_v59, %v325_v59  ;;  %265 = vmatpush.bf16.msra.mxu0 %v256_v6  ;;  %v671_v40 = vsel %vm94_vm0, %v666_v37, 0 }
  0xa0   :  { %v374_v4 = vpack.c.b16 %v373_v0, %v373_v0 }
  0xa1   :  { %445 = vrot.lane.b32.xlu2 %v326_v60, %s1654_s14  ;;  %327 = vrot.lane.b32.xlu0 %v326_v60, %s1653_s1 }
  0xa2   :  { %443 = vrot.lane.b32.xlu1 %v321_v54, %s1654_s14  ;;  %v165_v1 = vpop.f32.mrf.mxu0 }
  0xa3   :  { %v179_v2 = vpop.f32.mrf.mxu1 }
  0xa4   :  { %v1823_v3 = vpack.c.bf16 %v179_v2, %v165_v1 }
  0xa5   :  { %1403 = vmatmul.msk.bf16.vlgmr.msrb.gmra.mxu3 %vm94_vm0, %v1774_v49 }
  0xa6   :  { %v397_v5 = vunpack.c.l.b16 %v1823_v3  ;;  %v275_v7 = vsel %vm254_vm1, %v1823_v3, 0 }
  0xa7   :  { %284 = vmatpush.bf16.msra.mxu1 %v275_v7 }
  0xa8   :  { %v1835_v8 = vpack.c.b16 %v397_v5, %v397_v5 }
  0xa9   :  { %534 = vrot.lane.b32.xlu2 %v297_v53, %s1655_s15  ;;  %420 = vrot.lane.b32.xlu0 %v292_v43, %s1654_s14 }
  0xaa   :  { %532 = vrot.lane.b32.xlu1 %v292_v43, %s1655_s15 }
  0xb1   :  { %557 = vrot.lane.b32.xlu0 %v326_v60, %s1655_s15  ;;  %555 = vrot.lane.b32.xlu2 %v321_v54, %s1655_s15 }
  0xb2   :  { %778 = vrot.lane.b32.xlu1 %v1783_v57, %s1653_s1 }
  0xb9   :  { %753 = vrot.lane.b32.xlu0 %v1772_v47, %s1653_s1  ;;  %750 = vrot.lane.b32.xlu2 %v1768_v41, %s1653_s1 }
  0xba   :  { %871 = vrot.lane.b32.xlu1 %v1772_v47, %s1654_s14 }
  0xc1   :  { %775 = vrot.lane.b32.xlu0 %v1774_v49, %s1653_s1  ;;  %896 = vrot.lane.b32.xlu2 %v1783_v57, %s1654_s14 }
  0xc2   :  { %893 = vrot.lane.b32.xlu1 %v1774_v49, %s1654_s14 }
  0xc9   :  { %868 = vrot.lane.b32.xlu0 %v1768_v41, %s1654_s14  ;;  %989 = vrot.lane.b32.xlu2 %v1772_v47, %s1655_s15 }
  0xca   :  { %986 = vrot.lane.b32.xlu1 %v1768_v41, %s1655_s15 }
  0xd1   :  { %1014 = vrot.lane.b32.xlu0 %v1783_v57, %s1655_s15  ;;  %1011 = vrot.lane.b32.xlu2 %v1774_v49, %s1655_s15 }
  0xd2   :  { %375 = vrot.lane.b32.xlu1 %v374_v4, %s1653_s1 }
  0xd9   :  { %490 = vrot.lane.b32.xlu2 %v374_v4, %s1654_s14  ;;  %511 = vrot.lane.b32.xlu0 %v1835_v8, %s1654_s14 }
  0xe1   :  { %602 = vrot.lane.b32.xlu2 %v374_v4, %s1655_s15 }
  0xe9   :  { %399 = vrot.lane.b32.xlu2 %v1835_v8, %s1653_s1 }
  0xf3   :  { %v423_v9 = vpop.permute.xlu2 %422 }
  0xf4   :  { %v428_v17 = vsel %vm94_vm0, %v423_v9, 0 }
  0xfb   :  { %v446_v10 = vpop.permute.xlu2 %445 }
  0xfc   :  { %v451_v23 = vsel %vm94_vm0, %v446_v10, 0 }
 0x103   :  { %v535_v11 = vpop.permute.xlu2 %534 }
 0x104   :  { %v294_v12 = vpop.permute.xlu1 %293  ;;  %v540_v20 = vsel %vm94_vm0, %v535_v11, 0 }
 0x10b   :  { %v299_v13 = vpop.permute.xlu0 %298  ;;  %v556_v14 = vpop.permute.xlu2 %555 }
 0x10c   :  { %v304_v15 = vsel %vm94_vm0, %v299_v13, 0  ;;  %v323_v16 = vpop.permute.xlu1 %322 }
 0x10d   :  { %313 = vmatpush.bf16.xpose.msra.mxu2 %v304_v15 }
 0x113   :  { %v328_v18 = vpop.permute.xlu0 %327  ;;  %v1845_v19 = vpop.permute.xlu2 %750 }
 0x114   :  { %v333_v21 = vsel %vm94_vm0, %v328_v18, 0  ;;  %1406 = vmatmul.msk.bf16.vlgmr.msra.gmra.mxu2 %vm94_vm0, %v294_v12  ;;  %v444_v22 = vpop.permute.xlu1 %443  ;;  %v752_v4 = vrot.slane %v1845_v19, 4 }
 0x115   :  { %437 = vmatpush.bf16.xpose.msrb.mxu2 %v428_v17  ;;  %342 = vmatpush.bf16.xpose.msra.mxu3 %v333_v21 }
 0x11b   :  { %v421_v24 = vpop.permute.xlu0 %420  ;;  %v897_v25 = vpop.permute.xlu2 %896 }
 0x11c   :  { %1407 = vmatmul.msk.bf16.vlgmr.msra.gmra.mxu3 %vm94_vm0, %v323_v16  ;;  %v533_v26 = vpop.permute.xlu1 %532  ;;  %v898_v60 = vrot.slane %v897_v25, 4 }
 0x11d   :  { %549 = vmatpush.bf16.xpose.msra.mxu2 %v540_v20  ;;  %460 = vmatpush.bf16.xpose.msrb.mxu3 %v451_v23 }
 0x11e   :  { %v903_v2 = vsel %vm94_vm0, %v898_v60, 0 }
 0x120   :  { %v1852_v27 = vpop.f32.mrf.mxu2 }
 0x121   :  { %v227_v29 = vsel %vm226_vm2, %v1852_v27, -inf }
 0x122   :  { %228 = vmax.xlane.f32.xlu0 %v227_v29 }
 0x123   :  { %v558_v30 = vpop.permute.xlu0 %557  ;;  %v990_v31 = vpop.permute.xlu2 %989 }
 0x124   :  { %v563_v32 = vsel %vm94_vm0, %v558_v30, 0  ;;  %1410 = vmatmul.msk.bf16.vlgmr.msrb.gmra.mxu2 %vm94_vm0, %v421_v24  ;;  %v779_v34 = vpop.permute.xlu1 %778  ;;  %v991_v41 = vrot.slane %v990_v31, 4 }
 0x125   :  { %659 = vmatpush.bf16.xpose.msrb.mxu2 %v650_v33  ;;  %572 = vmatpush.bf16.xpose.msra.mxu3 %v563_v32  ;;  %v780_v48 = vrot.slane %v779_v34, 4 }
 0x126   :  { %v996_v5 = vsel %vm94_vm0, %v991_v41, 0 }
 0x127   :  { %v785_v52 = vsel %vm94_vm0, %v780_v48, 0 }
 0x128   :  { %v1860_v35 = vpop.f32.mrf.mxu3  ;;  %v205_v36 = vpop.f32.mrf.mxu2 }
 0x129   :  { %v230_v38 = vsel %vm226_vm2, %v1860_v35, -inf }
 0x12a   :  { %231 = vmax.xlane.f32.xlu1 %v230_v38 }
 0x12b   :  { %v1012_v39 = vpop.permute.xlu2 %1011  ;;  %v754_v42 = vpop.permute.xlu0 %753 }
 0x12c   :  { %1411 = vmatmul.msk.bf16.vlgmr.msrb.gmra.mxu3 %vm94_vm0, %v444_v22  ;;  %v872_v43 = vpop.permute.xlu1 %871  ;;  %v755_v44 = vrot.slane %v754_v42, 4  ;;  %v1013_v13 = vrot.slane %v1012_v39, 4 }
 0x12d   :  { %680 = vmatpush.bf16.xpose.msrb.mxu3 %v671_v40  ;;  %v873_v53 = vrot.slane %v872_v43, 4 }
 0x12e   :  { %v760_v47 = vsel %vm94_vm0, %v755_v44, 0 }
 0x12f   :  { %v878_v58 = vsel %vm94_vm0, %v873_v53, 0 }
 0x130   :  { %v224_v45 = vpop.f32.mrf.mxu3 }
 0x133   :  { %v1867_v46 = vpop.permute.xlu2 %490  ;;  %v776_v54 = vpop.permute.xlu0 %775 }
 0x134   :  { %1414 = vmatmul.msk.bf16.vlgmr.msra.gmra.mxu2 %vm94_vm0, %v533_v26  ;;  %v894_v50 = vpop.permute.xlu1 %893  ;;  %v777_v7 = vrot.slane %v776_v54, 4 }
 0x135   :  { %769 = vmatpush.bf16.xpose.msra.mxu2 %v760_v47  ;;  %v895_v11 = vrot.slane %v894_v50, 4 }
 0x13b   :  { %v1871_v51 = vpop.permute.xlu2 %602  ;;  %v869_v0 = vpop.permute.xlu0 %868 }
 0x13c   :  { %1415 = vmatmul.msk.bf16.vlgmr.msra.gmra.mxu3 %vm94_vm0, %v556_v14  ;;  %v987_v55 = vpop.permute.xlu1 %986  ;;  %v870_v10 = vrot.slane %v869_v0, 4 }
 0x13d   :  { %794 = vmatpush.bf16.xpose.msra.mxu3 %v785_v52  ;;  %v988_v12 = vrot.slane %v987_v55, 4 }
 0x143   :  { %v400_v57 = vpop.permute.xlu2 %399  ;;  %v1015_v6 = vpop.permute.xlu0 %1014 }
 0x144   :  { %1418 = vmatmul.msk.bf16.vlgmr.msrb.gmra.mxu2 %vm94_vm0, %v644_v56  ;;  %v405_v59 = vsel %vm254_vm1, %v400_v57, 0  ;;  %v376_v62 = vpop.permute.xlu1 %375  ;;  %v1016_v49 = vrot.slane %v1015_v6, 4 }
 0x145   :  { %887 = vmatpush.bf16.xpose.msrb.mxu2 %v878_v58  ;;  %414 = vmatpush.bf16.msrb.mxu1 %v405_v59  ;;  %v381_v1 = vsel %vm254_vm1, %v376_v62, 0 }
 0x146   :  { %390 = vmatpush.bf16.msrb.mxu0 %v381_v1  ;;  %v1021_v9 = vsel %vm94_vm0, %v1016_v49, 0 }
 0x14b   :  { %v1892_v14 = vpop.permute.xlu0 %511 }
 0x14c   :  { %1419 = vmatmul.msk.bf16.vlgmr.msrb.gmra.mxu3 %vm94_vm0, %v665_v61 }
 0x14d   :  { %912 = vmatpush.bf16.xpose.msrb.mxu3 %v903_v2 }
 0x154   :  { %1422 = vmatmul.msk.bf16.vlgmr.msra.gmra.mxu2 %vm94_vm0, %v752_v4 }
 0x155   :  { %1005 = vmatpush.bf16.xpose.msra.mxu2 %v996_v5 }
 0x15c   :  { %1423 = vmatmul.msk.bf16.vlgmr.msra.gmra.mxu3 %vm94_vm0, %v777_v7 }
 0x15d   :  { %1030 = vmatpush.bf16.xpose.msra.mxu3 %v1021_v9 }
 0x164   :  { %1426 = vmatmul.msk.bf16.vlgmr.msrb.gmra.mxu2 %vm94_vm0, %v870_v10 }
 0x16c   :  { %1427 = vmatmul.msk.bf16.vlgmr.msrb.gmra.mxu3 %vm94_vm0, %v895_v11 }
 0x174   :  { %1430 = vmatmul.msk.bf16.vlgmr.msra.gmra.mxu2 %vm94_vm0, %v988_v12 }
 0x17c   :  { %1431 = vmatmul.msk.bf16.vlgmr.msra.gmra.mxu3 %vm94_vm0, %v1013_v13 }
 0x195   :  { %v229_v15 = vpop.xlane.xlu0 %228 }
 0x196   :  { %v233_v16 = vsub.f32 %v1852_v27, %v229_v15 }
 0x197   :  { %v1895_v17 = vpop.f32.mrf.mxu2 }
 0x198   :  { %v235_v18 = vmul.f32 1.442695, %v233_v16  ;;  %v348_v19 = vsel %vm226_vm2, %v1895_v17, -inf }
 0x199   :  { %349 = vmax.xlane.f32.xlu2 %v348_v19 }
 0x19a   :  { %1563 = vpow2.f32 %v235_v18 }
 0x19d   :  { %v232_v20 = vpop.xlane.xlu1 %231 }
 0x19e   :  { %v234_v21 = vsub.f32 %v1860_v35, %v232_v20 }
 0x19f   :  { %v317_v22 = vpop.f32.mrf.mxu2  ;;  %v1900_v23 = vpop.f32.mrf.mxu3 }
 0x1a0   :  { %v1902_v24 = vpop.eup %1563  ;;  %v237_v25 = vmul.f32 1.442695, %v234_v21  ;;  %v351_v26 = vsel %vm226_vm2, %v1900_v23, -inf }
 0x1a1   :  { %352 = vmax.xlane.f32.xlu2 %v351_v26  ;;  %v239_v27 = vsel %vm226_vm2, %v1902_v24, 0.0 }
 0x1a2   :  { %1565 = vpow2.f32 %v237_v25  ;;  %240 = vadd.xlane.f32.xlu1 %v239_v27  ;;  %v496_v27 = vsel %vm254_vm1, %v1867_v46, 0  ;;  %v517_v46 = vsel %vm254_vm1, %v1892_v14, 0 }
 0x1a7   :  { %v346_v28 = vpop.f32.mrf.mxu3  ;;  %v1908_v29 = vpop.f32.mrf.mxu2 }
 0x1a8   :  { %v1910_v30 = vpop.eup %1565  ;;  %v466_v31 = vsel %vm226_vm2, %v1908_v29, -inf }
 0x1a9   :  { %467 = vmax.xlane.f32.xlu0 %v466_v31  ;;  %v242_v32 = vsel %vm226_vm2, %v1910_v30, 0.0 }
 0x1aa   :  { %243 = vadd.xlane.f32.xlu2 %v242_v32 }
 0x1af   :  { %v441_v33 = vpop.f32.mrf.mxu2  ;;  %v1916_v34 = vpop.f32.mrf.mxu3 }
 0x1b0   :  { %v469_v35 = vsel %vm226_vm2, %v1916_v34, -inf }
 0x1b1   :  { %470 = vmax.xlane.f32.xlu1 %v469_v35 }
 0x1b7   :  { %v464_v36 = vpop.f32.mrf.mxu3  ;;  %v1920_v37 = vpop.f32.mrf.mxu2 }
 0x1b8   :  { %v578_v38 = vsel %vm226_vm2, %v1920_v37, -inf }
 0x1b9   :  { %579 = vmax.xlane.f32.xlu2 %v578_v38 }
 0x1bf   :  { %v553_v39 = vpop.f32.mrf.mxu2  ;;  %v1924_v40 = vpop.f32.mrf.mxu3 }
 0x1c0   :  { %v581_v42 = vsel %vm226_vm2, %v1924_v40, -inf }
 0x1c1   :  { %582 = vmax.xlane.f32.xlu0 %v581_v42 }
 0x1c7   :  { %v576_v43 = vpop.f32.mrf.mxu3  ;;  %v1928_v44 = vpop.f32.mrf.mxu2 }
 0x1c8   :  { %v686_v45 = vsel %vm226_vm2, %v1928_v44, -inf }
 0x1c9   :  { %687 = vmax.xlane.f32.xlu0 %v686_v45 }
 0x1ca   :  { %623 = vrot.lane.b32.xlu1 %v1835_v8, %s1655_s15 }
 0x1cf   :  { %v663_v47 = vpop.f32.mrf.mxu2  ;;  %v1934_v48 = vpop.f32.mrf.mxu3 }
 0x1d0   :  { %v689_v62 = vsel %vm226_vm2, %v1934_v48, -inf }
 0x1d7   :  { %v684_v50 = vpop.f32.mrf.mxu3  ;;  %v1936_v52 = vpop.f32.mrf.mxu2 }
 0x1d8   :  { %v800_v53 = vsel %vm226_vm2, %v1936_v52, -inf }
 0x1d9   :  { %801 = vmax.xlane.f32.xlu0 %v800_v53 }
 0x1df   :  { %v773_v54 = vpop.f32.mrf.mxu2  ;;  %v1940_v55 = vpop.f32.mrf.mxu3 }
 0x1e0   :  { %v803_v56 = vsel %vm226_vm2, %v1940_v55, -inf }
 0x1e1   :  { %804 = vmax.xlane.f32.xlu0 %v803_v56 }
 0x1e7   :  { %v798_v57 = vpop.f32.mrf.mxu3  ;;  %v1944_v58 = vpop.f32.mrf.mxu2 }
 0x1e8   :  { %v918_v8 = vsel %vm226_vm2, %v1944_v58, -inf }
 0x1e9   :  { %919 = vmax.xlane.f32.xlu2 %v918_v8 }
 0x1ef   :  { %v891_v59 = vpop.f32.mrf.mxu2  ;;  %v1948_v60 = vpop.f32.mrf.mxu3 }
 0x1f0   :  { %v921_v61 = vsel %vm226_vm2, %v1948_v60, -inf }
 0x1f1   :  { %922 = vmax.xlane.f32.xlu0 %v921_v61 }
 0x1f4   :  { %690 = vmax.xlane.f32.xlu1 %v689_v62 }
 0x1f7   :  { %v916_v0 = vpop.f32.mrf.mxu3  ;;  %v1954_v1 = vpop.f32.mrf.mxu2 }
 0x1f8   :  { %v1036_v2 = vsel %vm226_vm2, %v1954_v1, -inf }
 0x1f9   :  { %1037 = vmax.xlane.f32.xlu0 %v1036_v2 }
 0x1ff   :  { %v1009_v41 = vpop.f32.mrf.mxu2  ;;  %v1958_v4 = vpop.f32.mrf.mxu3 }
 0x200   :  { %v1039_v5 = vsel %vm226_vm2, %v1958_v4, -inf }
 0x201   :  { %1040 = vmax.xlane.f32.xlu0 %v1039_v5 }
 0x207   :  { %v1034_v6 = vpop.f32.mrf.mxu3 }
 0x20c   :  { %v350_v49 = vpop.xlane.xlu2 %349 }
 0x20d   :  { %v354_v7 = vsub.f32 %v1895_v17, %v350_v49 }
 0x20f   :  { %v356_v9 = vmul.f32 1.442695, %v354_v7 }
 0x211   :  { %1567 = vpow2.f32 %v356_v9 }
 0x214   :  { %v353_v10 = vpop.xlane.xlu2 %352 }
 0x215   :  { %v355_v11 = vsub.f32 %v1900_v23, %v353_v10  ;;  %v241_v12 = vpop.xlane.xlu1 %240 }
 0x216   :  { %1569 = vrcp.f32 %v241_v12 }
 0x217   :  { %v1964_v13 = vpop.eup %1567  ;;  %v358_v15 = vmul.f32 1.442695, %v355_v11 }
 0x218   :  { %v360_v16 = vsel %vm226_vm2, %v1964_v13, 0.0 }
 0x219   :  { %1571 = vpow2.f32 %v358_v15  ;;  %361 = vadd.xlane.f32.xlu2 %v360_v16 }
 0x21c   :  { %v1570_v18 = vpop.eup %1569  ;;  %v468_v19 = vpop.xlane.xlu0 %467 }
 0x21d   :  { %v247_v20 = vmul.f32 %v1570_v18, %v1902_v24  ;;  %v472_v17 = vsub.f32 %v1908_v29, %v468_v19  ;;  %v244_v21 = vpop.xlane.xlu2 %243 }
 0x21e   :  { %1573 = vrcp.f32 %v244_v21 }
 0x21f   :  { %v1970_v22 = vpop.eup %1571  ;;  %v249_v23 = vpack.c.bf16 %v247_v20, %v247_v20  ;;  %v474_v25 = vmul.f32 1.442695, %v472_v17 }
 0x220   :  { %v363_v26 = vsel %vm226_vm2, %v1970_v22, 0.0 }
 0x221   :  { %1575 = vpow2.f32 %v474_v25  ;;  %1404 = vmatmul.msk.bf16.vlgmr.msra.gmra.mxu0 %vm226_vm2, %v249_v23  ;;  %364 = vadd.xlane.f32.xlu0 %v363_v26 }
 0x222   :  { %505 = vmatpush.bf16.msra.mxu0 %v496_v27 }
 0x224   :  { %v1574_v24 = vpop.eup %1573  ;;  %v471_v28 = vpop.xlane.xlu1 %470 }
 0x225   :  { %v248_v29 = vmul.f32 %v1574_v24, %v1910_v30  ;;  %v473_v31 = vsub.f32 %v1916_v34, %v471_v28 }
 0x227   :  { %v1979_v32 = vpop.eup %1575  ;;  %v250_v33 = vpack.c.bf16 %v248_v29, %v248_v29  ;;  %v476_v35 = vmul.f32 1.442695, %v473_v31 }
 0x228   :  { %v478_v36 = vsel %vm226_vm2, %v1979_v32, 0.0 }
 0x229   :  { %1577 = vpow2.f32 %v476_v35  ;;  %479 = vadd.xlane.f32.xlu0 %v478_v36  ;;  %1405 = vmatmul.msk.bf16.vlgmr.msra.gmra.mxu1 %vm226_vm2, %v250_v33  ;;  %v608_v33 = vsel %vm254_vm1, %v1871_v51, 0 }
 0x22a   :  { %526 = vmatpush.bf16.msra.mxu1 %v517_v46 }
 0x22c   :  { %v580_v38 = vpop.xlane.xlu2 %579 }
 0x22d   :  { %v584_v30 = vsub.f32 %v1920_v37, %v580_v38 }
 0x22f   :  { %v1987_v39 = vpop.eup %1577  ;;  %v586_v34 = vmul.f32 1.442695, %v584_v30 }
 0x230   :  { %v481_v42 = vsel %vm226_vm2, %v1987_v39, 0.0 }
 0x231   :  { %1579 = vpow2.f32 %v586_v34  ;;  %482 = vadd.xlane.f32.xlu1 %v481_v42  ;;  %846 = vrot.lane.b32.xlu2 %v1823_v3, %s1653_s1 }
 0x234   :  { %v583_v14 = vpop.xlane.xlu0 %582 }
 0x235   :  { %v585_v43 = vsub.f32 %v1924_v40, %v583_v14 }
 0x237   :  { %v1994_v45 = vpop.eup %1579  ;;  %v588_v47 = vmul.f32 1.442695, %v585_v43  ;;  %v710_v43 = vrot.slane %v1814_v63, 4 }
 0x238   :  { %v590_v37 = vsel %vm226_vm2, %v1994_v45, 0.0 }
 0x239   :  { %1581 = vpow2.f32 %v588_v47  ;;  %591 = vadd.xlane.f32.xlu1 %v590_v37 }
 0x23c   :  { %v688_v54 = vpop.xlane.xlu0 %687  ;;  %v624_v41 = vpop.permute.xlu1 %623 }
 0x23d   :  { %824 = vrot.lane.b32.xlu0 %v1814_v63, %s1653_s1  ;;  %v692_v40 = vsub.f32 %v1928_v44, %v688_v54  ;;  %v629_v34 = vsel %vm254_vm1, %v624_v41, 0 }
 0x23f   :  { %v2000_v50 = vpop.eup %1581  ;;  %v694_v56 = vmul.f32 1.442695, %v692_v40 }
 0x240   :  { %v593_v53 = vsel %vm226_vm2, %v2000_v50, 0.0 }
 0x241   :  { %594 = vadd.xlane.f32.xlu1 %v593_v53  ;;  %1583 = vpow2.f32 %v694_v56  ;;  %v715_v53 = vsel %vm254_vm1, %v710_v43, 0 }
 0x247   :  { %v2006_v59 = vpop.eup %1583 }
 0x248   :  { %v698_v62 = vsel %vm226_vm2, %v2006_v59, 0.0 }
 0x24c   :  { %v802_v57 = vpop.xlane.xlu0 %801 }
 0x24d   :  { %v806_v8 = vsub.f32 %v1936_v52, %v802_v57 }
 0x24f   :  { %v808_v61 = vmul.f32 1.442695, %v806_v8 }
 0x251   :  { %1585 = vpow2.f32 %v808_v61 }
 0x254   :  { %v805_v0 = vpop.xlane.xlu0 %804 }
 0x255   :  { %v807_v2 = vsub.f32 %v1940_v55, %v805_v0 }
 0x257   :  { %v810_v5 = vmul.f32 1.442695, %v807_v2  ;;  %v2011_v44 = vpop.eup %1585 }
 0x258   :  { %v812_v52 = vsel %vm226_vm2, %v2011_v44, 0.0 }
 0x259   :  { %1587 = vpow2.f32 %v810_v5 }
 0x25a   :  { %699 = vadd.xlane.f32.xlu2 %v698_v62 }
 0x25c   :  { %v920_v6 = vpop.xlane.xlu2 %919 }
 0x25d   :  { %v924_v49 = vsub.f32 %v1944_v58, %v920_v6 }
 0x25f   :  { %v926_v11 = vmul.f32 1.442695, %v924_v49  ;;  %v2018_v15 = vpop.eup %1587 }
 0x260   :  { %v815_v58 = vsel %vm226_vm2, %v2018_v15, 0.0 }
 0x264   :  { %v923_v7 = vpop.xlane.xlu0 %922 }
 0x265   :  { %v925_v12 = vsub.f32 %v1948_v60, %v923_v7 }
 0x267   :  { %v691_v9 = vpop.xlane.xlu1 %690  ;;  %813 = vadd.xlane.f32.xlu0 %v812_v52  ;;  %v928_v16 = vmul.f32 1.442695, %v925_v12 }
 0x268   :  { %v693_v10 = vsub.f32 %v1934_v48, %v691_v9 }
 0x26a   :  { %v696_v55 = vmul.f32 1.442695, %v693_v10 }
 0x26c   :  { %1589 = vpow2.f32 %v696_v55  ;;  %v1038_v21 = vpop.xlane.xlu0 %1037 }
 0x26d   :  { %1591 = vpow2.f32 %v926_v11  ;;  %v1042_v23 = vsub.f32 %v1954_v1, %v1038_v21 }
 0x26e   :  { %1593 = vpow2.f32 %v928_v16 }
 0x26f   :  { %816 = vadd.xlane.f32.xlu0 %v815_v58  ;;  %v1044_v27 = vmul.f32 1.442695, %v1042_v23 }
 0x272   :  { %v2022_v18 = vpop.eup %1589  ;;  %964 = vrot.lane.b32.xlu2 %v1823_v3, %s1654_s14 }
 0x273   :  { %v2026_v48 = vpop.eup %1591  ;;  %v701_v60 = vsel %vm226_vm2, %v2022_v18, 0.0 }
 0x274   :  { %702 = vadd.xlane.f32.xlu1 %v701_v60  ;;  %v930_v19 = vsel %vm226_vm2, %v2026_v48, 0.0  ;;  %v2032_v20 = vpop.eup %1593  ;;  %v1041_v25 = vpop.xlane.xlu0 %1040 }
 0x275   :  { %v933_v17 = vsel %vm226_vm2, %v2032_v20, 0.0  ;;  %v1043_v40 = vsub.f32 %v1958_v4, %v1041_v25 }
 0x277   :  { %931 = vadd.xlane.f32.xlu0 %v930_v19  ;;  %v1046_v61 = vmul.f32 1.442695, %v1043_v40 }
 0x27c   :  { %934 = vadd.xlane.f32.xlu1 %v933_v17 }
 0x28b   :  { %1060 = vrot.lane.b32.xlu0 %v1814_v63, %s1655_s15 }
 0x28c   :  { %v362_v26 = vpop.xlane.xlu2 %361 }
 0x28d   :  { %1595 = vrcp.f32 %v362_v26 }
 0x28e   :  { %1597 = vpow2.f32 %v1044_v27 }
 0x293   :  { %v1596_v24 = vpop.eup %1595  ;;  %1082 = vrot.lane.b32.xlu0 %v1823_v3, %s1655_s15 }
 0x294   :  { %v368_v28 = vmul.f32 %v1596_v24, %v1964_v13  ;;  %v365_v29 = vpop.xlane.xlu0 %364  ;;  %v2044_v31 = vpop.eup %1597 }
 0x295   :  { %1599 = vrcp.f32 %v365_v29  ;;  %942 = vrot.lane.b32.xlu1 %v1814_v63, %s1654_s14  ;;  %v1048_v35 = vsel %vm226_vm2, %v2044_v31, 0.0  ;;  %v847_v6 = vpop.permute.xlu2 %846 }
 0x296   :  { %v370_v1 = vpack.c.bf16 %v368_v28, %v368_v28  ;;  %v848_v7 = vrot.slane %v847_v6, 4 }
 0x298   :  { %1408 = vmatmul.msk.bf16.vlgmr.msrb.gmra.mxu0 %vm226_vm2, %v370_v1  ;;  %v853_v11 = vsel %vm254_vm1, %v848_v7, 0 }
 0x299   :  { %617 = vmatpush.bf16.msrb.mxu0 %v608_v33 }
 0x29b   :  { %v1600_v36 = vpop.eup %1599  ;;  %1049 = vadd.xlane.f32.xlu2 %v1048_v35 }
 0x29c   :  { %v369_v13 = vmul.f32 %v1600_v36, %v1970_v22  ;;  %v480_v46 = vpop.xlane.xlu0 %479 }
 0x29d   :  { %1601 = vrcp.f32 %v480_v46 }
 0x29e   :  { %v371_v38 = vpack.c.bf16 %v369_v13, %v369_v13  ;;  %v2052_v30 = vpop.f32.mrf.mxu0 }
 0x2a0   :  { %1409 = vmatmul.msk.bf16.vlgmr.msrb.gmra.mxu1 %vm226_vm2, %v371_v38 }
 0x2a1   :  { %638 = vmatpush.bf16.msrb.mxu1 %v629_v34 }
 0x2a3   :  { %v1602_v51 = vpop.eup %1601 }
 0x2a4   :  { %v486_v42 = vmul.f32 %v1602_v51, %v1979_v32  ;;  %v483_v14 = vpop.xlane.xlu1 %482  ;;  %v730_v32 = vrot.slane %v1823_v3, 4 }
 0x2a5   :  { %1603 = vrcp.f32 %v483_v14 }
 0x2a6   :  { %v488_v47 = vpack.c.bf16 %v486_v42, %v486_v42  ;;  %v269_v37 = vpop.f32.mrf.mxu0  ;;  %v2058_v22 = vpop.f32.mrf.mxu1  ;;  %v735_v62 = vsel %vm254_vm1, %v730_v32, 0 }
 0x2a8   :  { %1412 = vmatmul.msk.bf16.vlgmr.msra.gmra.mxu0 %vm226_vm2, %v488_v47 }
 0x2a9   :  { %724 = vmatpush.bf16.msra.mxu0 %v715_v53 }
 0x2ab   :  { %v1604_v54 = vpop.eup %1603 }
 0x2ac   :  { %v487_v56 = vmul.f32 %v1604_v54, %v1987_v39  ;;  %v592_v57 = vpop.xlane.xlu1 %591 }
 0x2ad   :  { %1605 = vrcp.f32 %v592_v57 }
 0x2ae   :  { %v489_v63 = vpack.c.bf16 %v487_v56, %v487_v56  ;;  %v288_v8 = vpop.f32.mrf.mxu1  ;;  %1607 = vpow2.f32 %v1046_v61 }
 0x2af   :  { %v825_v0 = vpop.permute.xlu0 %824 }
 0x2b0   :  { %1413 = vmatmul.msk.bf16.vlgmr.msra.gmra.mxu1 %vm226_vm2, %v489_v63  ;;  %v826_v4 = vrot.slane %v825_v0, 4 }
 0x2b1   :  { %744 = vmatpush.bf16.msra.mxu1 %v735_v62 }
 0x2b2   :  { %v831_v3 = vsel %vm254_vm1, %v826_v4, 0 }
 0x2b3   :  { %v1606_v2 = vpop.eup %1605 }
 0x2b4   :  { %v598_v41 = vmul.f32 %v1606_v2, %v1994_v45  ;;  %v595_v5 = vpop.xlane.xlu1 %594  ;;  %v2070_v49 = vpop.eup %1607 }
 0x2b5   :  { %1609 = vrcp.f32 %v595_v5  ;;  %v1051_v45 = vsel %vm226_vm2, %v2070_v49, 0.0 }
 0x2b6   :  { %v600_v39 = vpack.c.bf16 %v598_v41, %v598_v41 }
 0x2b8   :  { %1416 = vmatmul.msk.bf16.vlgmr.msrb.gmra.mxu0 %vm226_vm2, %v600_v39 }
 0x2b9   :  { %840 = vmatpush.bf16.msrb.mxu0 %v831_v3 }
 0x2bb   :  { %v1610_v52 = vpop.eup %1609 }
 0x2bc   :  { %v599_v9 = vmul.f32 %v1610_v52, %v2000_v50 }
 0x2be   :  { %v601_v10 = vpack.c.bf16 %v599_v9, %v599_v9 }
 0x2bf   :  { %1052 = vadd.xlane.f32.xlu1 %v1051_v45 }
 0x2c0   :  { %1417 = vmatmul.msk.bf16.vlgmr.msrb.gmra.mxu1 %vm226_vm2, %v601_v10 }
 0x2c1   :  { %862 = vmatpush.bf16.msrb.mxu1 %v853_v11 }
 0x2cd   :  { %v700_v12 = vpop.xlane.xlu2 %699 }
 0x2ce   :  { %1611 = vrcp.f32 %v700_v12 }
 0x2d4   :  { %v1612_v55 = vpop.eup %1611 }
 0x2d5   :  { %v706_v16 = vmul.f32 %v1612_v55, %v2006_v59  ;;  %v965_v25 = vpop.permute.xlu2 %964 }
 0x2d6   :  { %v966_v27 = vrot.slane %v965_v25, 4 }
 0x2d7   :  { %v708_v58 = vpack.c.bf16 %v706_v16, %v706_v16 }
 0x2d8   :  { %v971_v28 = vsel %vm254_vm1, %v966_v27, 0 }
 0x2d9   :  { %1420 = vmatmul.msk.bf16.vlgmr.msra.gmra.mxu0 %vm226_vm2, %v708_v58 }
 0x2da   :  { %v814_v60 = vpop.xlane.xlu0 %813 }
 0x2db   :  { %1613 = vrcp.f32 %v814_v60  ;;  %v1516_v60 = vld [vmem:[%s2181_s2 + $0x30] sm:$0xff] }
 0x2e1   :  { %v1614_v50 = vpop.eup %1613 }
 0x2e2   :  { %v820_v19 = vmul.f32 %v1614_v50, %v2011_v44  ;;  %v817_v23 = vpop.xlane.xlu0 %816  ;;  %v1515_v50 = vld [vmem:[%s2181_s2 + $0x28] sm:$0xff] }
 0x2e4   :  { %v822_v17 = vpack.c.bf16 %v820_v19, %v820_v19 }
 0x2e7   :  { %v703_v21 = vpop.xlane.xlu1 %702 }
 0x2e8   :  { %1615 = vrcp.f32 %v703_v21  ;;  %v1514_v21 = vld [vmem:[%s2181_s2 + $0x20] sm:$0xff] }
 0x2e9   :  { %1424 = vmatmul.msk.bf16.vlgmr.msrb.gmra.mxu0 %vm226_vm2, %v822_v17  ;;  %1617 = vrcp.f32 %v817_v23  ;;  %v1513_v23 = vld [vmem:[%s2181_s2 + $0x18] sm:$0xff] }
 0x2ea   :  { %v932_v29 = vpop.xlane.xlu0 %931 }
 0x2eb   :  { %1619 = vrcp.f32 %v932_v29 }
 0x2ee   :  { %v1616_v26 = vpop.eup %1615 }
 0x2ef   :  { %v707_v24 = vmul.f32 %v1616_v26, %v2022_v18  ;;  %v1618_v44 = vpop.eup %1617  ;;  %v935_v35 = vpop.xlane.xlu1 %934  ;;  %v1512_v26 = vld [vmem:[%s2181_s2 + $0x10] sm:$0xff] }
 0x2f0   :  { %v821_v1 = vmul.f32 %v1618_v44, %v2018_v15  ;;  %1621 = vrcp.f32 %v935_v35  ;;  %v1510_v44 = vld [vmem:[%s2181_s2] sm:$0xff] }
 0x2f1   :  { %v709_v59 = vpack.c.bf16 %v707_v24, %v707_v24  ;;  %v1620_v13 = vpop.eup %1619  ;;  %v1511_v24 = vld [vmem:[%s2181_s2 + $0x8] sm:$0xff] }
 0x2f2   :  { %v823_v36 = vpack.c.bf16 %v821_v1, %v821_v1  ;;  %v938_v51 = vmul.f32 %v1620_v13, %v2026_v48 }
 0x2f3   :  { %1421 = vmatmul.msk.bf16.vlgmr.msra.gmra.mxu1 %vm226_vm2, %v709_v59 }
 0x2f4   :  { %980 = vmatpush.bf16.msra.mxu1 %v971_v28  ;;  %v940_v37 = vpack.c.bf16 %v938_v51, %v938_v51 }
 0x2f6   :  { %v1622_v43 = vpop.eup %1621 }
 0x2f7   :  { %v939_v53 = vmul.f32 %v1622_v43, %v2032_v20 }
 0x2f9   :  { %v941_v40 = vpack.c.bf16 %v939_v53, %v939_v53 }
 0x2fd   :  { %v1061_v33 = vpop.permute.xlu0 %1060 }
 0x2fe   :  { %v1062_v38 = vrot.slane %v1061_v33, 4 }
 0x300   :  { %v1067_v47 = vsel %vm254_vm1, %v1062_v38, 0 }
 0x303   :  { %1425 = vmatmul.msk.bf16.vlgmr.msrb.gmra.mxu1 %vm226_vm2, %v823_v36 }
 0x305   :  { %v1083_v18 = vpop.permute.xlu0 %1082 }
 0x306   :  { %v1084_v46 = vrot.slane %v1083_v18, 4 }
 0x307   :  { %v943_v34 = vpop.permute.xlu1 %942 }
 0x308   :  { %v1089_v42 = vsel %vm254_vm1, %v1084_v46, 0  ;;  %v944_v14 = vrot.slane %v943_v34, 4 }
 0x309   :  { %1098 = vmatpush.bf16.msrb.mxu1 %v1089_v42 }
 0x30a   :  { %v949_v15 = vsel %vm254_vm1, %v944_v14, 0 }
 0x30b   :  { %958 = vmatpush.bf16.msra.mxu0 %v949_v15 }
 0x30e   :  { %1428 = vmatmul.msk.bf16.vlgmr.msra.gmra.mxu0 %vm226_vm2, %v940_v37  ;;  %v1050_v54 = vpop.xlane.xlu2 %1049 }
 0x30f   :  { %1076 = vmatpush.bf16.msrb.mxu0 %v1067_v47  ;;  %1623 = vrcp.f32 %v1050_v54 }
 0x313   :  { %1429 = vmatmul.msk.bf16.vlgmr.msra.gmra.mxu1 %vm226_vm2, %v941_v40 }
 0x315   :  { %v1624_v48 = vpop.eup %1623  ;;  %v392_v56 = vpop.f32.mrf.mxu0 }
 0x316   :  { %v1056_v57 = vmul.f32 %v1624_v48, %v2044_v31 }
 0x318   :  { %v1058_v32 = vpack.c.bf16 %v1056_v57, %v1056_v57  ;;  %v1524_v57 = vld [vmem:[%s2181_s2 + $0x70] sm:$0xff] }
 0x31d   :  { %v394_v63 = vpop.f32.mrf.mxu0  ;;  %v416_v8 = vpop.f32.mrf.mxu1 }
 0x31e   :  { %v1532_v61 = vpack.i.bf16 %v416_v8, %v392_v56  ;;  %1432 = vmatmul.msk.bf16.vlgmr.msrb.gmra.mxu0 %vm226_vm2, %v1058_v32  ;;  %v1525_v56 = vld [vmem:[%s2181_s2 + $0x78] sm:$0xff]  ;;  %v1523_v32 = vld [vmem:[%s2181_s2 + $0x68] sm:$0xff]  ;;  %v1522_v63 = vld [vmem:[%s2181_s2 + $0x60] sm:$0xff] }
 0x31f   :  { %1314 = vmatpush.bf16.msrb.mxu3 %v1525_v56  ;;  %v1521_v8 = vld [vmem:[%s2181_s2 + $0x58] sm:$0xff] }
 0x320   :  { %1533 = vrot.lane.b32.xlu0 %v1532_v61, %s1655_s15  ;;  %v1520_v61 = vld [vmem:[%s2181_s2 + $0x50] sm:$0xff] }
 0x323   :  { %1315 = vmatpush.bf16.msrb.mxu3 %v1524_v57 }
 0x325   :  { %v418_v20 = vpop.f32.mrf.mxu1  ;;  %v507_v62 = vpop.f32.mrf.mxu0 }
 0x326   :  { %v1519_v20 = vld [vmem:[%s2181_s2 + $0x48] sm:$0xff] }
 0x327   :  { %1316 = vmatpush.bf16.msrb.mxu3 %v1523_v32 }
 0x32b   :  { %1317 = vmatpush.bf16.msrb.mxu3 %v1522_v63 }
 0x32d   :  { %v509_v0 = vpop.f32.mrf.mxu0  ;;  %v528_v2 = vpop.f32.mrf.mxu1 }
 0x32e   :  { %v1537_v41 = vpack.i.bf16 %v528_v2, %v507_v62  ;;  %v1518_v62 = vld [vmem:[%s2181_s2 + $0x40] sm:$0xff] }
 0x32f   :  { %1318 = vmatpush.bf16.msrb.mxu3 %v1521_v8 }
 0x330   :  { %1538 = vrot.lane.b32.xlu2 %v1537_v41, %s1654_s14 }
 0x332   :  { %v1053_v4 = vpop.xlane.xlu1 %1052 }
 0x333   :  { %1625 = vrcp.f32 %v1053_v4  ;;  %1319 = vmatpush.bf16.msrb.mxu3 %v1520_v61 }
 0x335   :  { %v530_v5 = vpop.f32.mrf.mxu1  ;;  %v619_v39 = vpop.f32.mrf.mxu0 }
 0x337   :  { %1320 = vmatpush.bf16.msrb.mxu3 %v1519_v20 }
 0x339   :  { %v1626_v31 = vpop.eup %1625 }
 0x33a   :  { %v1057_v3 = vmul.f32 %v1626_v31, %v2070_v49  ;;  %v1517_v49 = vld [vmem:[%s2181_s2 + $0x38] sm:$0xff] }
 0x33b   :  { %1300 = vmatpush.bf16.msrb.mxu2 %v1517_v49  ;;  %1321 = vmatpush.bf16.msrb.mxu3 %v1518_v62 }
 0x33c   :  { %v1059_v6 = vpack.c.bf16 %v1057_v3, %v1057_v3 }
 0x33d   :  { %v621_v52 = vpop.f32.mrf.mxu0  ;;  %v640_v7 = vpop.f32.mrf.mxu1 }
 0x33e   :  { %v1542_v9 = vpack.i.bf16 %v640_v7, %v619_v39  ;;  %1433 = vmatmul.msk.bf16.vlgmr.msrb.gmra.mxu1 %vm226_vm2, %v1059_v6 }
 0x33f   :  { %1301 = vmatpush.bf16.msrb.mxu2 %v1516_v60 }
 0x340   :  { %1543 = vrot.lane.b32.xlu0 %v1542_v9, %s1653_s1 }
 0x343   :  { %1302 = vmatpush.bf16.msrb.mxu2 %v1515_v50 }
 0x345   :  { %v642_v10 = vpop.f32.mrf.mxu1 }
 0x347   :  { %1303 = vmatpush.bf16.msrb.mxu2 %v1514_v21 }
 0x34b   :  { %1304 = vmatpush.bf16.msrb.mxu2 %v1513_v23 }
 0x34f   :  { %1305 = vmatpush.bf16.msrb.mxu2 %v1512_v26 }
 0x353   :  { %1306 = vmatpush.bf16.msrb.mxu2 %v1511_v24 }
 0x356   :  { %v2100_v45 = vpop.f32.mrf.mxu0 }
 0x357   :  { %1307 = vmatpush.bf16.msrb.mxu2 %v1510_v44 }
 0x35e   :  { %v728_v11 = vpop.f32.mrf.mxu0 }
 0x366   :  { %v842_v12 = vpop.f32.mrf.mxu0 }
 0x36e   :  { %v844_v55 = vpop.f32.mrf.mxu0 }
 0x370   :  { %v2102_v16 = vpop.f32.mrf.mxu1 }
 0x378   :  { %v748_v58 = vpop.f32.mrf.mxu1 }
 0x380   :  { %v864_v19 = vpop.f32.mrf.mxu1 }
 0x381   :  { %v1547_v17 = vpack.i.bf16 %v864_v19, %v842_v12 }
 0x383   :  { %1548 = vrot.lane.b32.xlu1 %v1547_v17, %s1655_s15 }
 0x388   :  { %v866_v25 = vpop.f32.mrf.mxu1 }
 0x38a   :  { %v1539_v46 = vpop.permute.xlu2 %1538 }
 0x38b   :  { %v960_v27 = vpop.f32.mrf.mxu0  ;;  %v1541_v51 = vunpack.i.h.bf16 %v1539_v46  ;;  %v1540_v42 = vunpack.i.l.bf16 %v1539_v46 }
 0x390   :  { %v982_v59 = vpop.f32.mrf.mxu1 }
 0x391   :  { %v1552_v28 = vpack.i.bf16 %v982_v59, %v960_v27 }
 0x392   :  { %v1534_v36 = vpop.permute.xlu0 %1533 }
 0x393   :  { %v962_v29 = vpop.f32.mrf.mxu0  ;;  %1553 = vrot.lane.b32.xlu0 %v1552_v28, %s1654_s14  ;;  %v1536_v13 = vunpack.i.h.bf16 %v1534_v36  ;;  %v1535_v18 = vunpack.i.l.bf16 %v1534_v36 }
 0x395   :  { %v1153_v38 = vsel %vm94_vm0, %v2058_v22, %v1536_v13  ;;  %v1152_v34 = vsel %vm94_vm0, %v2052_v30, %v1535_v18 }
 0x396   :  { %v1155_v47 = vsel %vm1154_vm3, %v1152_v34, %v1540_v42  ;;  %v1156_v37 = vsel %vm1154_vm3, %v1153_v38, %v1541_v51 }
 0x398   :  { %v984_v1 = vpop.f32.mrf.mxu1 }
 0x39b   :  { %v1078_v33 = vpop.f32.mrf.mxu0 }
 0x3a3   :  { %v1080_v35 = vpop.f32.mrf.mxu0 }
 0x3b2   :  { %v1544_v14 = vpop.permute.xlu0 %1543 }
 0x3b3   :  { %v1546_v43 = vunpack.i.h.bf16 %v1544_v14  ;;  %v1545_v15 = vunpack.i.l.bf16 %v1544_v14 }
 0x3b5   :  { %v1159_v53 = vsel %vm1157_vm4, %v1156_v37, %v1546_v43  ;;  %v1158_v54 = vsel %vm1157_vm4, %v1155_v47, %v1545_v15 }
 0x3b6   :  { %v1166_v40 = vpack.c.bf16 %v1159_v53, %v1158_v54 }
 0x3b8   :  { %1308 = vmatmul.bf16.vlgmr.msrb.gmra.mxu2 %v1166_v40 }
 0x3bb   :  { %v1100_v22 = vpop.f32.mrf.mxu1 }
 0x3bc   :  { %v1557_v48 = vpack.i.bf16 %v1100_v22, %v1078_v33 }
 0x3be   :  { %1558 = vrot.lane.b32.xlu0 %v1557_v48, %s1653_s1 }
 0x3c3   :  { %v1102_v30 = vpop.f32.mrf.mxu1 }
 0x3f5   :  { %v1549_v2 = vpop.permute.xlu1 %1548 }
 0x3f6   :  { %v1551_v41 = vunpack.i.h.bf16 %v1549_v2  ;;  %v1550_v4 = vunpack.i.l.bf16 %v1549_v2 }
 0x3f8   :  { %v1161_v3 = vsel %vm94_vm0, %v2102_v16, %v1551_v41  ;;  %v1160_v6 = vsel %vm94_vm0, %v2100_v45, %v1550_v4  ;;  %v1562_v16 = vld [vmem:[%s2182_s3] ss:$0 sm:$0xff]  ;;  %s1657_s3 = smov 128  }
 0x405   :  { %v1554_v0 = vpop.permute.xlu0 %1553 }
 0x406   :  { %v1556_v5 = vunpack.i.h.bf16 %v1554_v0  ;;  %v1555_v39 = vunpack.i.l.bf16 %v1554_v0 }
 0x408   :  { %v1163_v9 = vsel %vm1154_vm3, %v1161_v3, %v1556_v5  ;;  %v1162_v10 = vsel %vm1154_vm3, %v1160_v6, %v1555_v39 }
 0x430   :  { %v1559_v31 = vpop.permute.xlu0 %1558 }
 0x431   :  { %v1561_v52 = vunpack.i.h.bf16 %v1559_v31  ;;  %v1560_v7 = vunpack.i.l.bf16 %v1559_v31 }
 0x433   :  { %v1165_v11 = vsel %vm1157_vm4, %v1163_v9, %v1561_v52  ;;  %v1164_v12 = vsel %vm1157_vm4, %v1162_v10, %v1560_v7 }
 0x434   :  { %v1167_v55 = vpack.c.bf16 %v1165_v11, %v1164_v12 }
 0x436   :  { %1322 = vmatmul.bf16.vlgmr.msrb.gmra.mxu3 %v1167_v55 }
 0x43b   :  { %v1309_v58 = vpop.f32.mrf.mxu2 }
 0x43c   :  { %v1310_v49 = vadd.f32 %v1562_v16, %v1309_v58 }
 0x443   :  { %v1311_v50 = vpop.f32.mrf.mxu2 }
 0x444   :  { %v1312_v19 = vadd.f32 %v1562_v16, %v1311_v50 }
 0x4b9   :  { %v1323_v60 = vpop.f32.mrf.mxu3 }
 0x4ba   :  { %v1324_v45 = vadd.f32 %v1323_v60, %v1310_v49 }
 0x4bc   :  { %1328 = vst.msk [vmem:[#allocation2] sm:$0xff] %vm94_vm0, %v1324_v45 }
 0x4c1   :  { %v1325_v17 = vpop.f32.mrf.mxu3 }
 0x4c2   :  { %v1326_v21 = vadd.f32 %v1325_v17, %v1312_v19 }
 0x4c4   :  { %1329 = vst.msk [vmem:[#allocation2 + $0x8] sm:$0xff] %vm94_vm0, %v1326_v21 }
 0x4c5   :  { %1342 = dma.vmem_to_hbm [thread:$0]  %s1335_s22, 256, %s1337_s25, [#allocation3], %s1657_s3, %s1657_s3, %s1658_s26  }
 0x4c6   :  { %1651 = dma.done.wait [#allocation3], 256  }
 0x4c7   :  { %1652 = vsyncadd [#allocation3], 4294967040 }
 0x4c8   :  { %1347 = vsyncpa [#allocation3], 1 }

</bundles_post_ra>
